<compile_context>
chip_gen: v5e
topology: v5e:2x2
jax: 0.10.0
libtpu: 0.0.40
codegen_flags: <defaults>
</compile_context>

<pallas_src>
from functools import partial

import jax
import jax.numpy as jnp
from jax.experimental import pallas as pl
from jax.experimental.pallas import tpu as pltpu


def _pick_row_tile(Ho):
    """Row-tile height: a multiple of 8 that divides Ho (respecting the (8,128)
    sublane rule), capped at 64 rows; falls back to the full height."""
    if Ho % 8 != 0:
        return Ho
    for th in (64, 48, 32, 24, 16, 8):
        if th < Ho and Ho % th == 0:
            return th
    return Ho


def _corr_kernel(first_ref, second_ref, out_ref, pad_scr, secq_scr):
    # first_ref : (1, C, TH, Wo)         first, subsampled, this row tile
    # second_ref: (1, C, Ho, Wo)         second, subsampled, full height (per batch)
    # out_ref   : (1, 49, TH, Wo)        49 correlation channels, this row tile
    # pad_scr   : VMEM (C, TH+6, Wo+6)   zero-padded second window for this tile
    # secq_scr  : VMEM (7, C, TH+6, Wo)  the 7 lane-shifted slabs of pad_scr
    C = first_ref.shape[1]
    TH = first_ref.shape[2]
    Wo = first_ref.shape[3]
    Ho = second_ref.shape[2]
    R = pl.num_programs(1)
    r = pl.program_id(1)

    # ---- build the zero-padded second window for this row tile in VMEM.
    # Scratch row i <-> global (subsampled) second row r*TH - 3 + i,
    # scratch col j <-> global col j - 3; out-of-range rows/cols stay zero.
    pad_scr[...] = jnp.zeros_like(pad_scr)
    if R == 1:
        pad_scr[:, 3:3 + Ho, 3:3 + Wo] = second_ref[0].astype(pad_scr.dtype)
    else:
        row0 = r * TH

        @pl.when(r == 0)
        def _():
            pad_scr[:, 3:3 + TH + 3, 3:3 + Wo] = (
                second_ref[0, :, pl.ds(0, TH + 3), :].astype(pad_scr.dtype))

        @pl.when(r == R - 1)
        def _():
            pad_scr[:, 0:TH + 3, 3:3 + Wo] = (
                second_ref[0, :, pl.ds(Ho - (TH + 3), TH + 3), :]
                .astype(pad_scr.dtype))

        @pl.when(jnp.logical_and(r > 0, r < R - 1))
        def _():
            pad_scr[:, 0:TH + 6, 3:3 + Wo] = (
                second_ref[0, :, pl.ds(row0 - 3, TH + 6), :]
                .astype(pad_scr.dtype))

    # ---- hoist the 7 horizontal (lane) shifts out of the 49-way loop.
    sec = pad_scr[...]                                   # (C, TH+6, Wo+6) f32
    for q in range(7):
        secq_scr[q] = sec[:, :, q:q + Wo]                # (C, TH+6, Wo)

    # ---- 49 displacement correlations; 1/C mean folded into one prescale.
    f = first_ref[0].astype(jnp.float32) * (1.0 / C)     # (C, TH, Wo)
    for p in range(7):                                   # vertical displacement
        for q in range(7):                               # horizontal displacement
            # Static sublane-offset ref load -> no in-register relayout.
            win = secq_scr[q, :, p:p + TH, :]            # (C, TH, Wo)
            # Channel reduction over the leading (untiled) axis -> VALU adds.
            # Store each map immediately: bounds the live vreg set.
            out_ref[0, p * 7 + q] = jnp.sum(f * win, axis=0).astype(out_ref.dtype)


@partial(jax.jit, static_argnums=(2,))
def module_correlation(first, second, stride):
    """first, second: (B, C, H, W). Returns (B, 49, ceil(H/s), ceil(W/s))."""
    assert first.shape == second.shape
    B, C, H, W = first.shape
    Ho = -(-H // stride)
    Wo = -(-W // stride)

    # Subsample at the stride (identity for stride == 1). The original 3*s
    # zero halo on full-res `second` is exactly a 3-pixel halo on the
    # subsampled grid; that halo is built inside the kernel (no jnp.pad pass).
    if stride > 1:
        first_sub = first[:, :, ::stride, ::stride]      # (B, C, Ho, Wo)
        second_sub = second[:, :, ::stride, ::stride]    # (B, C, Ho, Wo)
    else:
        first_sub, second_sub = first, second

    TH = _pick_row_tile(Ho)
    R = Ho // TH

    # VMEM budget: double-buffered blocks + single-buffered scratch.
    itemsize = jnp.dtype(first.dtype).itemsize
    blk_bytes = itemsize * (C * TH * Wo + C * Ho * Wo + 49 * TH * Wo)
    scr_bytes = 4 * (C * (TH + 6) * (Wo + 6) + 7 * C * (TH + 6) * Wo)
    need = 2 * blk_bytes + scr_bytes
    vmem_limit = None
    if 2 * need > 16 * 1024 * 1024:
        vmem_limit = int(min(2 * need, 40 * 1024 * 1024))

    out = pl.pallas_call(
        _corr_kernel,
        out_shape=jax.ShapeDtypeStruct((B, 49, Ho, Wo), first.dtype),
        grid=(B, R),
        in_specs=[
            pl.BlockSpec((1, C, TH, Wo), lambda b, r: (b, 0, r, 0)),
            # Full-height block, indexed by batch only: DMA'd once per batch,
            # revisited across the row tiles of that batch.
            pl.BlockSpec((1, C, Ho, Wo), lambda b, r: (b, 0, 0, 0)),
        ],
        out_specs=pl.BlockSpec((1, 49, TH, Wo), lambda b, r: (b, 0, r, 0)),
        scratch_shapes=[
            pltpu.VMEM((C, TH + 6, Wo + 6), jnp.float32),
            pltpu.VMEM((7, C, TH + 6, Wo), jnp.float32),
        ],
        compiler_params=pltpu.CompilerParams(
            dimension_semantics=("parallel", "parallel"),
            vmem_limit_bytes=vmem_limit,
        ),
    )(first_sub, second_sub)
    return out


def module_correlation_ref(first, second, stride):
    """Pure-JAX reference for checking the kernel."""
    B, C, H, W = first.shape
    Ho = -(-H // stride)
    Wo = -(-W // stride)
    pad = 3 * stride
    f = first[:, :, ::stride, ::stride]
    sp = jnp.pad(second, ((0, 0), (0, 0), (pad, pad), (pad, pad)))
    outs = []
    for p in range(7):
        for q in range(7):
            s = sp[:, :, p * stride::stride, q * stride::stride][:, :, :Ho, :Wo]
            outs.append(jnp.mean(f * s, axis=1))
    return jnp.stack(outs, axis=1)


if __name__ == "__main__":
    key = jax.random.PRNGKey(0)

    configs = [
        # (B, C, H, W, stride)
        (2, 4, 16, 16, 2),   # toy shape: single row tile per batch
        (1, 4, 32, 32, 2),   # B=1, two row tiles: exercises the edge-halo branches
        (1, 3, 9, 9, 1),     # stride 1, odd spatial size, single row tile
    ]
    for i, (B, C, H, W, s) in enumerate(configs):
        k1, k2 = jax.random.split(jax.random.fold_in(key, i))
        tensor_first = jax.random.normal(k1, (B, C, H, W), dtype=jnp.float32)
        tensor_second = jax.random.normal(k2, (B, C, H, W), dtype=jnp.float32)

        out = jax.block_until_ready(module_correlation(tensor_first, tensor_second, s))
        ref = module_correlation_ref(tensor_first, tensor_second, s)

        Ho, Wo = -(-H // s), -(-W // s)
        assert out.shape == (B, 49, Ho, Wo), (out.shape, (B, 49, Ho, Wo))
        assert jnp.allclose(out, ref, atol=1e-5, rtol=1e-5), f"mismatch vs reference (config {i})"

    print("KERNEL_OK")
</pallas_src>

<mosaic_0001>
module attributes {stable_mosaic.version = 11 : i64} {
  func.func @_corr_kernel(%arg0: i32, %arg1: i32, %arg2: memref<1x4x8x8xf32, #tpu.memory_space<vmem>>, %arg3: memref<1x4x8x8xf32, #tpu.memory_space<vmem>>, %arg4: memref<1x49x8x8xf32, #tpu.memory_space<vmem>>, %arg5: memref<4x14x14xf32, #tpu.memory_space<vmem>>, %arg6: memref<7x4x14x8xf32, #tpu.memory_space<vmem>>) attributes {dimension_semantics = [#tpu.dimension_semantics<parallel>, #tpu.dimension_semantics<parallel>], iteration_bounds = array<i64: 2, 1>, scalar_prefetch = 0 : i64, scratch_operands = 2 : i64, tpu.core_type = #tpu.core_type<tc>, window_params = [{transform_indices = @transform_0, window_bounds = array<i64: 1, 4, 8, 8>}, {transform_indices = @transform_1, window_bounds = array<i64: 1, 4, 8, 8>}, {transform_indices = @transform_2, window_bounds = array<i64: 1, 49, 8, 8>}]} {
    %cst = arith.constant 0.000000e+00 : f32
    %0 = vector.broadcast %cst : f32 to vector<4x14x14xf32>
    %c0 = arith.constant 0 : index
    %c0_0 = arith.constant 0 : index
    %c0_1 = arith.constant 0 : index
    %1 = vector.load %arg5[%c0, %c0_0, %c0_1] : memref<4x14x14xf32, #tpu.memory_space<vmem>>, vector<4x14x14xf32>
    tpu.vector_store %arg5[%c0, %c0_0, %c0_1], %0 {strides = array<i32>} : memref<4x14x14xf32, #tpu.memory_space<vmem>>, vector<4x14x14xf32>,
    %c0_2 = arith.constant 0 : index
    %c0_3 = arith.constant 0 : index
    %c0_4 = arith.constant 0 : index
    %c0_5 = arith.constant 0 : index
    %2 = vector.load %arg3[%c0_2, %c0_3, %c0_4, %c0_5] : memref<1x4x8x8xf32, #tpu.memory_space<vmem>>, vector<1x4x8x8xf32>
    %3 = vector.shape_cast %2 : vector<1x4x8x8xf32> to vector<4x8x8xf32>
    %c0_6 = arith.constant 0 : index
    %c3 = arith.constant 3 : index
    %c3_7 = arith.constant 3 : index
    %4 = vector.load %arg5[%c0_6, %c3, %c3_7] : memref<4x14x14xf32, #tpu.memory_space<vmem>>, vector<4x8x8xf32>
    tpu.vector_store %arg5[%c0_6, %c3, %c3_7], %3 {strides = array<i32>} : memref<4x14x14xf32, #tpu.memory_space<vmem>>, vector<4x8x8xf32>,
    %c0_8 = arith.constant 0 : index
    %c0_9 = arith.constant 0 : index
    %c0_10 = arith.constant 0 : index
    %5 = vector.load %arg5[%c0_8, %c0_9, %c0_10] : memref<4x14x14xf32, #tpu.memory_space<vmem>>, vector<4x14x14xf32>
    %6 = vector.extract_strided_slice %5 {offsets = [0, 0, 0], sizes = [4, 14, 8], strides = [1, 1, 1]} : vector<4x14x14xf32> to vector<4x14x8xf32>
    %c0_11 = arith.constant 0 : index
    %c0_12 = arith.constant 0 : index
    %c0_13 = arith.constant 0 : index
    %c0_14 = arith.constant 0 : index
    %7 = vector.load %arg6[%c0_11, %c0_12, %c0_13, %c0_14] : memref<7x4x14x8xf32, #tpu.memory_space<vmem>>, vector<1x4x14x8xf32>
    %8 = vector.shape_cast %7 : vector<1x4x14x8xf32> to vector<4x14x8xf32>
    %9 = vector.shape_cast %6 : vector<4x14x8xf32> to vector<1x4x14x8xf32>
    tpu.vector_store %arg6[%c0_11, %c0_12, %c0_13, %c0_14], %9 {strides = array<i32>} : memref<7x4x14x8xf32, #tpu.memory_space<vmem>>, vector<1x4x14x8xf32>,
    %10 = vector.extract_strided_slice %5 {offsets = [0, 0, 1], sizes = [4, 14, 8], strides = [1, 1, 1]} : vector<4x14x14xf32> to vector<4x14x8xf32>
    %c1 = arith.constant 1 : index
    %c0_15 = arith.constant 0 : index
    %c0_16 = arith.constant 0 : index
    %c0_17 = arith.constant 0 : index
    %11 = vector.load %arg6[%c1, %c0_15, %c0_16, %c0_17] : memref<7x4x14x8xf32, #tpu.memory_space<vmem>>, vector<1x4x14x8xf32>
    %12 = vector.shape_cast %11 : vector<1x4x14x8xf32> to vector<4x14x8xf32>
    %13 = vector.shape_cast %10 : vector<4x14x8xf32> to vector<1x4x14x8xf32>
    tpu.vector_store %arg6[%c1, %c0_15, %c0_16, %c0_17], %13 {strides = array<i32>} : memref<7x4x14x8xf32, #tpu.memory_space<vmem>>, vector<1x4x14x8xf32>,
    %14 = vector.extract_strided_slice %5 {offsets = [0, 0, 2], sizes = [4, 14, 8], strides = [1, 1, 1]} : vector<4x14x14xf32> to vector<4x14x8xf32>
    %c2 = arith.constant 2 : index
    %c0_18 = arith.constant 0 : index
    %c0_19 = arith.constant 0 : index
    %c0_20 = arith.constant 0 : index
    %15 = vector.load %arg6[%c2, %c0_18, %c0_19, %c0_20] : memref<7x4x14x8xf32, #tpu.memory_space<vmem>>, vector<1x4x14x8xf32>
    %16 = vector.shape_cast %15 : vector<1x4x14x8xf32> to vector<4x14x8xf32>
    %17 = vector.shape_cast %14 : vector<4x14x8xf32> to vector<1x4x14x8xf32>
    tpu.vector_store %arg6[%c2, %c0_18, %c0_19, %c0_20], %17 {strides = array<i32>} : memref<7x4x14x8xf32, #tpu.memory_space<vmem>>, vector<1x4x14x8xf32>,
    %18 = vector.extract_strided_slice %5 {offsets = [0, 0, 3], sizes = [4, 14, 8], strides = [1, 1, 1]} : vector<4x14x14xf32> to vector<4x14x8xf32>
    %c3_21 = arith.constant 3 : index
    %c0_22 = arith.constant 0 : index
    %c0_23 = arith.constant 0 : index
    %c0_24 = arith.constant 0 : index
    %19 = vector.load %arg6[%c3_21, %c0_22, %c0_23, %c0_24] : memref<7x4x14x8xf32, #tpu.memory_space<vmem>>, vector<1x4x14x8xf32>
    %20 = vector.shape_cast %19 : vector<1x4x14x8xf32> to vector<4x14x8xf32>
    %21 = vector.shape_cast %18 : vector<4x14x8xf32> to vector<1x4x14x8xf32>
    tpu.vector_store %arg6[%c3_21, %c0_22, %c0_23, %c0_24], %21 {strides = array<i32>} : memref<7x4x14x8xf32, #tpu.memory_space<vmem>>, vector<1x4x14x8xf32>,
    %22 = vector.extract_strided_slice %5 {offsets = [0, 0, 4], sizes = [4, 14, 8], strides = [1, 1, 1]} : vector<4x14x14xf32> to vector<4x14x8xf32>
    %c4 = arith.constant 4 : index
    %c0_25 = arith.constant 0 : index
    %c0_26 = arith.constant 0 : index
    %c0_27 = arith.constant 0 : index
    %23 = vector.load %arg6[%c4, %c0_25, %c0_26, %c0_27] : memref<7x4x14x8xf32, #tpu.memory_space<vmem>>, vector<1x4x14x8xf32>
    %24 = vector.shape_cast %23 : vector<1x4x14x8xf32> to vector<4x14x8xf32>
    %25 = vector.shape_cast %22 : vector<4x14x8xf32> to vector<1x4x14x8xf32>
    tpu.vector_store %arg6[%c4, %c0_25, %c0_26, %c0_27], %25 {strides = array<i32>} : memref<7x4x14x8xf32, #tpu.memory_space<vmem>>, vector<1x4x14x8xf32>,
    %26 = vector.extract_strided_slice %5 {offsets = [0, 0, 5], sizes = [4, 14, 8], strides = [1, 1, 1]} : vector<4x14x14xf32> to vector<4x14x8xf32>
    %c5 = arith.constant 5 : index
    %c0_28 = arith.constant 0 : index
    %c0_29 = arith.constant 0 : index
    %c0_30 = arith.constant 0 : index
    %27 = vector.load %arg6[%c5, %c0_28, %c0_29, %c0_30] : memref<7x4x14x8xf32, #tpu.memory_space<vmem>>, vector<1x4x14x8xf32>
    %28 = vector.shape_cast %27 : vector<1x4x14x8xf32> to vector<4x14x8xf32>
    %29 = vector.shape_cast %26 : vector<4x14x8xf32> to vector<1x4x14x8xf32>
    tpu.vector_store %arg6[%c5, %c0_28, %c0_29, %c0_30], %29 {strides = array<i32>} : memref<7x4x14x8xf32, #tpu.memory_space<vmem>>, vector<1x4x14x8xf32>,
    %30 = vector.extract_strided_slice %5 {offsets = [0, 0, 6], sizes = [4, 14, 8], strides = [1, 1, 1]} : vector<4x14x14xf32> to vector<4x14x8xf32>
    %c6 = arith.constant 6 : index
    %c0_31 = arith.constant 0 : index
    %c0_32 = arith.constant 0 : index
    %c0_33 = arith.constant 0 : index
    %31 = vector.load %arg6[%c6, %c0_31, %c0_32, %c0_33] : memref<7x4x14x8xf32, #tpu.memory_space<vmem>>, vector<1x4x14x8xf32>
    %32 = vector.shape_cast %31 : vector<1x4x14x8xf32> to vector<4x14x8xf32>
    %33 = vector.shape_cast %30 : vector<4x14x8xf32> to vector<1x4x14x8xf32>
    tpu.vector_store %arg6[%c6, %c0_31, %c0_32, %c0_33], %33 {strides = array<i32>} : memref<7x4x14x8xf32, #tpu.memory_space<vmem>>, vector<1x4x14x8xf32>,
    %c0_34 = arith.constant 0 : index
    %c0_35 = arith.constant 0 : index
    %c0_36 = arith.constant 0 : index
    %c0_37 = arith.constant 0 : index
    %34 = vector.load %arg2[%c0_34, %c0_35, %c0_36, %c0_37] : memref<1x4x8x8xf32, #tpu.memory_space<vmem>>, vector<1x4x8x8xf32>
    %35 = vector.shape_cast %34 : vector<1x4x8x8xf32> to vector<4x8x8xf32>
    %cst_38 = arith.constant 2.500000e-01 : f32
    %36 = vector.broadcast %cst_38 : f32 to vector<4x8x8xf32>
    %37 = arith.mulf %35, %36 : vector<4x8x8xf32>
    %c0_39 = arith.constant 0 : index
    %c0_40 = arith.constant 0 : index
    %c0_41 = arith.constant 0 : index
    %c0_42 = arith.constant 0 : index
    %38 = vector.load %arg6[%c0_39, %c0_40, %c0_41, %c0_42] : memref<7x4x14x8xf32, #tpu.memory_space<vmem>>, vector<1x4x8x8xf32>
    %39 = vector.shape_cast %38 : vector<1x4x8x8xf32> to vector<4x8x8xf32>
    %40 = arith.mulf %37, %39 : vector<4x8x8xf32>
    %cst_43 = arith.constant dense<0.000000e+00> : vector<8x8xf32>
    %41 = vector.multi_reduction <add>, %40, %cst_43 [0] : vector<4x8x8xf32> to vector<8x8xf32>
    %c0_44 = arith.constant 0 : index
    %c0_45 = arith.constant 0 : index
    %c0_46 = arith.constant 0 : index
    %c0_47 = arith.constant 0 : index
    %42 = vector.load %arg4[%c0_44, %c0_45, %c0_46, %c0_47] : memref<1x49x8x8xf32, #tpu.memory_space<vmem>>, vector<1x1x8x8xf32>
    %43 = vector.shape_cast %42 : vector<1x1x8x8xf32> to vector<8x8xf32>
    %44 = vector.shape_cast %41 : vector<8x8xf32> to vector<1x1x8x8xf32>
    tpu.vector_store %arg4[%c0_44, %c0_45, %c0_46, %c0_47], %44 {strides = array<i32>} : memref<1x49x8x8xf32, #tpu.memory_space<vmem>>, vector<1x1x8x8xf32>,
    %c1_48 = arith.constant 1 : index
    %c0_49 = arith.constant 0 : index
    %c0_50 = arith.constant 0 : index
    %c0_51 = arith.constant 0 : index
    %45 = vector.load %arg6[%c1_48, %c0_49, %c0_50, %c0_51] : memref<7x4x14x8xf32, #tpu.memory_space<vmem>>, vector<1x4x8x8xf32>
    %46 = vector.shape_cast %45 : vector<1x4x8x8xf32> to vector<4x8x8xf32>
    %47 = arith.mulf %37, %46 : vector<4x8x8xf32>
    %cst_52 = arith.constant dense<0.000000e+00> : vector<8x8xf32>
    %48 = vector.multi_reduction <add>, %47, %cst_52 [0] : vector<4x8x8xf32> to vector<8x8xf32>
    %c0_53 = arith.constant 0 : index
    %c1_54 = arith.constant 1 : index
    %c0_55 = arith.constant 0 : index
    %c0_56 = arith.constant 0 : index
    %49 = vector.load %arg4[%c0_53, %c1_54, %c0_55, %c0_56] : memref<1x49x8x8xf32, #tpu.memory_space<vmem>>, vector<1x1x8x8xf32>
    %50 = vector.shape_cast %49 : vector<1x1x8x8xf32> to vector<8x8xf32>
    %51 = vector.shape_cast %48 : vector<8x8xf32> to vector<1x1x8x8xf32>
    tpu.vector_store %arg4[%c0_53, %c1_54, %c0_55, %c0_56], %51 {strides = array<i32>} : memref<1x49x8x8xf32, #tpu.memory_space<vmem>>, vector<1x1x8x8xf32>,
    %c2_57 = arith.constant 2 : index
    %c0_58 = arith.constant 0 : index
    %c0_59 = arith.constant 0 : index
    %c0_60 = arith.constant 0 : index
    %52 = vector.load %arg6[%c2_57, %c0_58, %c0_59, %c0_60] : memref<7x4x14x8xf32, #tpu.memory_space<vmem>>, vector<1x4x8x8xf32>
    %53 = vector.shape_cast %52 : vector<1x4x8x8xf32> to vector<4x8x8xf32>
    %54 = arith.mulf %37, %53 : vector<4x8x8xf32>
    %cst_61 = arith.constant dense<0.000000e+00> : vector<8x8xf32>
    %55 = vector.multi_reduction <add>, %54, %cst_61 [0] : vector<4x8x8xf32> to vector<8x8xf32>
    %c0_62 = arith.constant 0 : index
    %c2_63 = arith.constant 2 : index
    %c0_64 = arith.constant 0 : index
    %c0_65 = arith.constant 0 : index
    %56 = vector.load %arg4[%c0_62, %c2_63, %c0_64, %c0_65] : memref<1x49x8x8xf32, #tpu.memory_space<vmem>>, vector<1x1x8x8xf32>
    %57 = vector.shape_cast %56 : vector<1x1x8x8xf32> to vector<8x8xf32>
    %58 = vector.shape_cast %55 : vector<8x8xf32> to vector<1x1x8x8xf32>
    tpu.vector_store %arg4[%c0_62, %c2_63, %c0_64, %c0_65], %58 {strides = array<i32>} : memref<1x49x8x8xf32, #tpu.memory_space<vmem>>, vector<1x1x8x8xf32>,
    %c3_66 = arith.constant 3 : index
    %c0_67 = arith.constant 0 : index
    %c0_68 = arith.constant 0 : index
    %c0_69 = arith.constant 0 : index
    %59 = vector.load %arg6[%c3_66, %c0_67, %c0_68, %c0_69] : memref<7x4x14x8xf32, #tpu.memory_space<vmem>>, vector<1x4x8x8xf32>
    %60 = vector.shape_cast %59 : vector<1x4x8x8xf32> to vector<4x8x8xf32>
    %61 = arith.mulf %37, %60 : vector<4x8x8xf32>
    %cst_70 = arith.constant dense<0.000000e+00> : vector<8x8xf32>
    %62 = vector.multi_reduction <add>, %61, %cst_70 [0] : vector<4x8x8xf32> to vector<8x8xf32>
    %c0_71 = arith.constant 0 : index
    %c3_72 = arith.constant 3 : index
    %c0_73 = arith.constant 0 : index
    %c0_74 = arith.constant 0 : index
    %63 = vector.load %arg4[%c0_71, %c3_72, %c0_73, %c0_74] : memref<1x49x8x8xf32, #tpu.memory_space<vmem>>, vector<1x1x8x8xf32>
    %64 = vector.shape_cast %63 : vector<1x1x8x8xf32> to vector<8x8xf32>
    %65 = vector.shape_cast %62 : vector<8x8xf32> to vector<1x1x8x8xf32>
    tpu.vector_store %arg4[%c0_71, %c3_72, %c0_73, %c0_74], %65 {strides = array<i32>} : memref<1x49x8x8xf32, #tpu.memory_space<vmem>>, vector<1x1x8x8xf32>,
    %c4_75 = arith.constant 4 : index
    %c0_76 = arith.constant 0 : index
    %c0_77 = arith.constant 0 : index
    %c0_78 = arith.constant 0 : index
    %66 = vector.load %arg6[%c4_75, %c0_76, %c0_77, %c0_78] : memref<7x4x14x8xf32, #tpu.memory_space<vmem>>, vector<1x4x8x8xf32>
    %67 = vector.shape_cast %66 : vector<1x4x8x8xf32> to vector<4x8x8xf32>
    %68 = arith.mulf %37, %67 : vector<4x8x8xf32>
    %cst_79 = arith.constant dense<0.000000e+00> : vector<8x8xf32>
    %69 = vector.multi_reduction <add>, %68, %cst_79 [0] : vector<4x8x8xf32> to vector<8x8xf32>
    %c0_80 = arith.constant 0 : index
    %c4_81 = arith.constant 4 : index
    %c0_82 = arith.constant 0 : index
    %c0_83 = arith.constant 0 : index
    %70 = vector.load %arg4[%c0_80, %c4_81, %c0_82, %c0_83] : memref<1x49x8x8xf32, #tpu.memory_space<vmem>>, vector<1x1x8x8xf32>
    %71 = vector.shape_cast %70 : vector<1x1x8x8xf32> to vector<8x8xf32>
    %72 = vector.shape_cast %69 : vector<8x8xf32> to vector<1x1x8x8xf32>
    tpu.vector_store %arg4[%c0_80, %c4_81, %c0_82, %c0_83], %72 {strides = array<i32>} : memref<1x49x8x8xf32, #tpu.memory_space<vmem>>, vector<1x1x8x8xf32>,
    %c5_84 = arith.constant 5 : index
    %c0_85 = arith.constant 0 : index
    %c0_86 = arith.constant 0 : index
    %c0_87 = arith.constant 0 : index
    %73 = vector.load %arg6[%c5_84, %c0_85, %c0_86, %c0_87] : memref<7x4x14x8xf32, #tpu.memory_space<vmem>>, vector<1x4x8x8xf32>
    %74 = vector.shape_cast %73 : vector<1x4x8x8xf32> to vector<4x8x8xf32>
    %75 = arith.mulf %37, %74 : vector<4x8x8xf32>
    %cst_88 = arith.constant dense<0.000000e+00> : vector<8x8xf32>
    %76 = vector.multi_reduction <add>, %75, %cst_88 [0] : vector<4x8x8xf32> to vector<8x8xf32>
    %c0_89 = arith.constant 0 : index
    %c5_90 = arith.constant 5 : index
    %c0_91 = arith.constant 0 : index
    %c0_92 = arith.constant 0 : index
    %77 = vector.load %arg4[%c0_89, %c5_90, %c0_91, %c0_92] : memref<1x49x8x8xf32, #tpu.memory_space<vmem>>, vector<1x1x8x8xf32>
    %78 = vector.shape_cast %77 : vector<1x1x8x8xf32> to vector<8x8xf32>
    %79 = vector.shape_cast %76 : vector<8x8xf32> to vector<1x1x8x8xf32>
    tpu.vector_store %arg4[%c0_89, %c5_90, %c0_91, %c0_92], %79 {strides = array<i32>} : memref<1x49x8x8xf32, #tpu.memory_space<vmem>>, vector<1x1x8x8xf32>,
    %c6_93 = arith.constant 6 : index
    %c0_94 = arith.constant 0 : index
    %c0_95 = arith.constant 0 : index
    %c0_96 = arith.constant 0 : index
    %80 = vector.load %arg6[%c6_93, %c0_94, %c0_95, %c0_96] : memref<7x4x14x8xf32, #tpu.memory_space<vmem>>, vector<1x4x8x8xf32>
    %81 = vector.shape_cast %80 : vector<1x4x8x8xf32> to vector<4x8x8xf32>
    %82 = arith.mulf %37, %81 : vector<4x8x8xf32>
    %cst_97 = arith.constant dense<0.000000e+00> : vector<8x8xf32>
    %83 = vector.multi_reduction <add>, %82, %cst_97 [0] : vector<4x8x8xf32> to vector<8x8xf32>
    %c0_98 = arith.constant 0 : index
    %c6_99 = arith.constant 6 : index
    %c0_100 = arith.constant 0 : index
    %c0_101 = arith.constant 0 : index
    %84 = vector.load %arg4[%c0_98, %c6_99, %c0_100, %c0_101] : memref<1x49x8x8xf32, #tpu.memory_space<vmem>>, vector<1x1x8x8xf32>
    %85 = vector.shape_cast %84 : vector<1x1x8x8xf32> to vector<8x8xf32>
    %86 = vector.shape_cast %83 : vector<8x8xf32> to vector<1x1x8x8xf32>
    tpu.vector_store %arg4[%c0_98, %c6_99, %c0_100, %c0_101], %86 {strides = array<i32>} : memref<1x49x8x8xf32, #tpu.memory_space<vmem>>, vector<1x1x8x8xf32>,
    %c0_102 = arith.constant 0 : index
    %c0_103 = arith.constant 0 : index
    %c1_104 = arith.constant 1 : index
    %c0_105 = arith.constant 0 : index
    %87 = vector.load %arg6[%c0_102, %c0_103, %c1_104, %c0_105] : memref<7x4x14x8xf32, #tpu.memory_space<vmem>>, vector<1x4x8x8xf32>
    %88 = vector.shape_cast %87 : vector<1x4x8x8xf32> to vector<4x8x8xf32>
    %89 = arith.mulf %37, %88 : vector<4x8x8xf32>
    %cst_106 = arith.constant dense<0.000000e+00> : vector<8x8xf32>
    %90 = vector.multi_reduction <add>, %89, %cst_106 [0] : vector<4x8x8xf32> to vector<8x8xf32>
    %c0_107 = arith.constant 0 : index
    %c7 = arith.constant 7 : index
    %c0_108 = arith.constant 0 : index
    %c0_109 = arith.constant 0 : index
    %91 = vector.load %arg4[%c0_107, %c7, %c0_108, %c0_109] : memref<1x49x8x8xf32, #tpu.memory_space<vmem>>, vector<1x1x8x8xf32>
    %92 = vector.shape_cast %91 : vector<1x1x8x8xf32> to vector<8x8xf32>
    %93 = vector.shape_cast %90 : vector<8x8xf32> to vector<1x1x8x8xf32>
    tpu.vector_store %arg4[%c0_107, %c7, %c0_108, %c0_109], %93 {strides = array<i32>} : memref<1x49x8x8xf32, #tpu.memory_space<vmem>>, vector<1x1x8x8xf32>,
    %c1_110 = arith.constant 1 : index
    %c0_111 = arith.constant 0 : index
    %c1_112 = arith.constant 1 : index
    %c0_113 = arith.constant 0 : index
    %94 = vector.load %arg6[%c1_110, %c0_111, %c1_112, %c0_113] : memref<7x4x14x8xf32, #tpu.memory_space<vmem>>, vector<1x4x8x8xf32>
    %95 = vector.shape_cast %94 : vector<1x4x8x8xf32> to vector<4x8x8xf32>
    %96 = arith.mulf %37, %95 : vector<4x8x8xf32>
    %cst_114 = arith.constant dense<0.000000e+00> : vector<8x8xf32>
    %97 = vector.multi_reduction <add>, %96, %cst_114 [0] : vector<4x8x8xf32> to vector<8x8xf32>
    %c0_115 = arith.constant 0 : index
    %c8 = arith.constant 8 : index
    %c0_116 = arith.constant 0 : index
    %c0_117 = arith.constant 0 : index
    %98 = vector.load %arg4[%c0_115, %c8, %c0_116, %c0_117] : memref<1x49x8x8xf32, #tpu.memory_space<vmem>>, vector<1x1x8x8xf32>
    %99 = vector.shape_cast %98 : vector<1x1x8x8xf32> to vector<8x8xf32>
    %100 = vector.shape_cast %97 : vector<8x8xf32> to vector<1x1x8x8xf32>
    tpu.vector_store %arg4[%c0_115, %c8, %c0_116, %c0_117], %100 {strides = array<i32>} : memref<1x49x8x8xf32, #tpu.memory_space<vmem>>, vector<1x1x8x8xf32>,
    %c2_118 = arith.constant 2 : index
    %c0_119 = arith.constant 0 : index
    %c1_120 = arith.constant 1 : index
    %c0_121 = arith.constant 0 : index
    %101 = vector.load %arg6[%c2_118, %c0_119, %c1_120, %c0_121] : memref<7x4x14x8xf32, #tpu.memory_space<vmem>>, vector<1x4x8x8xf32>
    %102 = vector.shape_cast %101 : vector<1x4x8x8xf32> to vector<4x8x8xf32>
    %103 = arith.mulf %37, %102 : vector<4x8x8xf32>
    %cst_122 = arith.constant dense<0.000000e+00> : vector<8x8xf32>
    %104 = vector.multi_reduction <add>, %103, %cst_122 [0] : vector<4x8x8xf32> to vector<8x8xf32>
    %c0_123 = arith.constant 0 : index
    %c9 = arith.constant 9 : index
    %c0_124 = arith.constant 0 : index
    %c0_125 = arith.constant 0 : index
    %105 = vector.load %arg4[%c0_123, %c9, %c0_124, %c0_125] : memref<1x49x8x8xf32, #tpu.memory_space<vmem>>, vector<1x1x8x8xf32>
    %106 = vector.shape_cast %105 : vector<1x1x8x8xf32> to vector<8x8xf32>
    %107 = vector.shape_cast %104 : vector<8x8xf32> to vector<1x1x8x8xf32>
    tpu.vector_store %arg4[%c0_123, %c9, %c0_124, %c0_125], %107 {strides = array<i32>} : memref<1x49x8x8xf32, #tpu.memory_space<vmem>>, vector<1x1x8x8xf32>,
    %c3_126 = arith.constant 3 : index
    %c0_127 = arith.constant 0 : index
    %c1_128 = arith.constant 1 : index
    %c0_129 = arith.constant 0 : index
    %108 = vector.load %arg6[%c3_126, %c0_127, %c1_128, %c0_129] : memref<7x4x14x8xf32, #tpu.memory_space<vmem>>, vector<1x4x8x8xf32>
    %109 = vector.shape_cast %108 : vector<1x4x8x8xf32> to vector<4x8x8xf32>
    %110 = arith.mulf %37, %109 : vector<4x8x8xf32>
    %cst_130 = arith.constant dense<0.000000e+00> : vector<8x8xf32>
    %111 = vector.multi_reduction <add>, %110, %cst_130 [0] : vector<4x8x8xf32> to vector<8x8xf32>
    %c0_131 = arith.constant 0 : index
    %c10 = arith.constant 10 : index
    %c0_132 = arith.constant 0 : index
    %c0_133 = arith.constant 0 : index
    %112 = vector.load %arg4[%c0_131, %c10, %c0_132, %c0_133] : memref<1x49x8x8xf32, #tpu.memory_space<vmem>>, vector<1x1x8x8xf32>
    %113 = vector.shape_cast %112 : vector<1x1x8x8xf32> to vector<8x8xf32>
    %114 = vector.shape_cast %111 : vector<8x8xf32> to vector<1x1x8x8xf32>
    tpu.vector_store %arg4[%c0_131, %c10, %c0_132, %c0_133], %114 {strides = array<i32>} : memref<1x49x8x8xf32, #tpu.memory_space<vmem>>, vector<1x1x8x8xf32>,
    %c4_134 = arith.constant 4 : index
    %c0_135 = arith.constant 0 : index
    %c1_136 = arith.constant 1 : index
    %c0_137 = arith.constant 0 : index
    %115 = vector.load %arg6[%c4_134, %c0_135, %c1_136, %c0_137] : memref<7x4x14x8xf32, #tpu.memory_space<vmem>>, vector<1x4x8x8xf32>
    %116 = vector.shape_cast %115 : vector<1x4x8x8xf32> to vector<4x8x8xf32>
    %117 = arith.mulf %37, %116 : vector<4x8x8xf32>
    %cst_138 = arith.constant dense<0.000000e+00> : vector<8x8xf32>
    %118 = vector.multi_reduction <add>, %117, %cst_138 [0] : vector<4x8x8xf32> to vector<8x8xf32>
    %c0_139 = arith.constant 0 : index
    %c11 = arith.constant 11 : index
    %c0_140 = arith.constant 0 : index
    %c0_141 = arith.constant 0 : index
    %119 = vector.load %arg4[%c0_139, %c11, %c0_140, %c0_141] : memref<1x49x8x8xf32, #tpu.memory_space<vmem>>, vector<1x1x8x8xf32>
    %120 = vector.shape_cast %119 : vector<1x1x8x8xf32> to vector<8x8xf32>
    %121 = vector.shape_cast %118 : vector<8x8xf32> to vector<1x1x8x8xf32>
    tpu.vector_store %arg4[%c0_139, %c11, %c0_140, %c0_141], %121 {strides = array<i32>} : memref<1x49x8x8xf32, #tpu.memory_space<vmem>>, vector<1x1x8x8xf32>,
    %c5_142 = arith.constant 5 : index
    %c0_143 = arith.constant 0 : index
    %c1_144 = arith.constant 1 : index
    %c0_145 = arith.constant 0 : index
    %122 = vector.load %arg6[%c5_142, %c0_143, %c1_144, %c0_145] : memref<7x4x14x8xf32, #tpu.memory_space<vmem>>, vector<1x4x8x8xf32>
    %123 = vector.shape_cast %122 : vector<1x4x8x8xf32> to vector<4x8x8xf32>
    %124 = arith.mulf %37, %123 : vector<4x8x8xf32>
    %cst_146 = arith.constant dense<0.000000e+00> : vector<8x8xf32>
    %125 = vector.multi_reduction <add>, %124, %cst_146 [0] : vector<4x8x8xf32> to vector<8x8xf32>
    %c0_147 = arith.constant 0 : index
    %c12 = arith.constant 12 : index
    %c0_148 = arith.constant 0 : index
    %c0_149 = arith.constant 0 : index
    %126 = vector.load %arg4[%c0_147, %c12, %c0_148, %c0_149] : memref<1x49x8x8xf32, #tpu.memory_space<vmem>>, vector<1x1x8x8xf32>
    %127 = vector.shape_cast %126 : vector<1x1x8x8xf32> to vector<8x8xf32>
    %128 = vector.shape_cast %125 : vector<8x8xf32> to vector<1x1x8x8xf32>
    tpu.vector_store %arg4[%c0_147, %c12, %c0_148, %c0_149], %128 {strides = array<i32>} : memref<1x49x8x8xf32, #tpu.memory_space<vmem>>, vector<1x1x8x8xf32>,
    %c6_150 = arith.constant 6 : index
    %c0_151 = arith.constant 0 : index
    %c1_152 = arith.constant 1 : index
    %c0_153 = arith.constant 0 : index
    %129 = vector.load %arg6[%c6_150, %c0_151, %c1_152, %c0_153] : memref<7x4x14x8xf32, #tpu.memory_space<vmem>>, vector<1x4x8x8xf32>
    %130 = vector.shape_cast %129 : vector<1x4x8x8xf32> to vector<4x8x8xf32>
    %131 = arith.mulf %37, %130 : vector<4x8x8xf32>
    %cst_154 = arith.constant dense<0.000000e+00> : vector<8x8xf32>
    %132 = vector.multi_reduction <add>, %131, %cst_154 [0] : vector<4x8x8xf32> to vector<8x8xf32>
    %c0_155 = arith.constant 0 : index
    %c13 = arith.constant 13 : index
    %c0_156 = arith.constant 0 : index
    %c0_157 = arith.constant 0 : index
    %133 = vector.load %arg4[%c0_155, %c13, %c0_156, %c0_157] : memref<1x49x8x8xf32, #tpu.memory_space<vmem>>, vector<1x1x8x8xf32>
    %134 = vector.shape_cast %133 : vector<1x1x8x8xf32> to vector<8x8xf32>
    %135 = vector.shape_cast %132 : vector<8x8xf32> to vector<1x1x8x8xf32>
    tpu.vector_store %arg4[%c0_155, %c13, %c0_156, %c0_157], %135 {strides = array<i32>} : memref<1x49x8x8xf32, #tpu.memory_space<vmem>>, vector<1x1x8x8xf32>,
    %c0_158 = arith.constant 0 : index
    %c0_159 = arith.constant 0 : index
    %c2_160 = arith.constant 2 : index
    %c0_161 = arith.constant 0 : index
    %136 = vector.load %arg6[%c0_158, %c0_159, %c2_160, %c0_161] : memref<7x4x14x8xf32, #tpu.memory_space<vmem>>, vector<1x4x8x8xf32>
    %137 = vector.shape_cast %136 : vector<1x4x8x8xf32> to vector<4x8x8xf32>
    %138 = arith.mulf %37, %137 : vector<4x8x8xf32>
    %cst_162 = arith.constant dense<0.000000e+00> : vector<8x8xf32>
    %139 = vector.multi_reduction <add>, %138, %cst_162 [0] : vector<4x8x8xf32> to vector<8x8xf32>
    %c0_163 = arith.constant 0 : index
    %c14 = arith.constant 14 : index
    %c0_164 = arith.constant 0 : index
    %c0_165 = arith.constant 0 : index
    %140 = vector.load %arg4[%c0_163, %c14, %c0_164, %c0_165] : memref<1x49x8x8xf32, #tpu.memory_space<vmem>>, vector<1x1x8x8xf32>
    %141 = vector.shape_cast %140 : vector<1x1x8x8xf32> to vector<8x8xf32>
    %142 = vector.shape_cast %139 : vector<8x8xf32> to vector<1x1x8x8xf32>
    tpu.vector_store %arg4[%c0_163, %c14, %c0_164, %c0_165], %142 {strides = array<i32>} : memref<1x49x8x8xf32, #tpu.memory_space<vmem>>, vector<1x1x8x8xf32>,
    %c1_166 = arith.constant 1 : index
    %c0_167 = arith.constant 0 : index
    %c2_168 = arith.constant 2 : index
    %c0_169 = arith.constant 0 : index
    %143 = vector.load %arg6[%c1_166, %c0_167, %c2_168, %c0_169] : memref<7x4x14x8xf32, #tpu.memory_space<vmem>>, vector<1x4x8x8xf32>
    %144 = vector.shape_cast %143 : vector<1x4x8x8xf32> to vector<4x8x8xf32>
    %145 = arith.mulf %37, %144 : vector<4x8x8xf32>
    %cst_170 = arith.constant dense<0.000000e+00> : vector<8x8xf32>
    %146 = vector.multi_reduction <add>, %145, %cst_170 [0] : vector<4x8x8xf32> to vector<8x8xf32>
    %c0_171 = arith.constant 0 : index
    %c15 = arith.constant 15 : index
    %c0_172 = arith.constant 0 : index
    %c0_173 = arith.constant 0 : index
    %147 = vector.load %arg4[%c0_171, %c15, %c0_172, %c0_173] : memref<1x49x8x8xf32, #tpu.memory_space<vmem>>, vector<1x1x8x8xf32>
    %148 = vector.shape_cast %147 : vector<1x1x8x8xf32> to vector<8x8xf32>
    %149 = vector.shape_cast %146 : vector<8x8xf32> to vector<1x1x8x8xf32>
    tpu.vector_store %arg4[%c0_171, %c15, %c0_172, %c0_173], %149 {strides = array<i32>} : memref<1x49x8x8xf32, #tpu.memory_space<vmem>>, vector<1x1x8x8xf32>,
    %c2_174 = arith.constant 2 : index
    %c0_175 = arith.constant 0 : index
    %c2_176 = arith.constant 2 : index
    %c0_177 = arith.constant 0 : index
    %150 = vector.load %arg6[%c2_174, %c0_175, %c2_176, %c0_177] : memref<7x4x14x8xf32, #tpu.memory_space<vmem>>, vector<1x4x8x8xf32>
    %151 = vector.shape_cast %150 : vector<1x4x8x8xf32> to vector<4x8x8xf32>
    %152 = arith.mulf %37, %151 : vector<4x8x8xf32>
    %cst_178 = arith.constant dense<0.000000e+00> : vector<8x8xf32>
    %153 = vector.multi_reduction <add>, %152, %cst_178 [0] : vector<4x8x8xf32> to vector<8x8xf32>
    %c0_179 = arith.constant 0 : index
    %c16 = arith.constant 16 : index
    %c0_180 = arith.constant 0 : index
    %c0_181 = arith.constant 0 : index
    %154 = vector.load %arg4[%c0_179, %c16, %c0_180, %c0_181] : memref<1x49x8x8xf32, #tpu.memory_space<vmem>>, vector<1x1x8x8xf32>
    %155 = vector.shape_cast %154 : vector<1x1x8x8xf32> to vector<8x8xf32>
    %156 = vector.shape_cast %153 : vector<8x8xf32> to vector<1x1x8x8xf32>
    tpu.vector_store %arg4[%c0_179, %c16, %c0_180, %c0_181], %156 {strides = array<i32>} : memref<1x49x8x8xf32, #tpu.memory_space<vmem>>, vector<1x1x8x8xf32>,
    %c3_182 = arith.constant 3 : index
    %c0_183 = arith.constant 0 : index
    %c2_184 = arith.constant 2 : index
    %c0_185 = arith.constant 0 : index
    %157 = vector.load %arg6[%c3_182, %c0_183, %c2_184, %c0_185] : memref<7x4x14x8xf32, #tpu.memory_space<vmem>>, vector<1x4x8x8xf32>
    %158 = vector.shape_cast %157 : vector<1x4x8x8xf32> to vector<4x8x8xf32>
    %159 = arith.mulf %37, %158 : vector<4x8x8xf32>
    %cst_186 = arith.constant dense<0.000000e+00> : vector<8x8xf32>
    %160 = vector.multi_reduction <add>, %159, %cst_186 [0] : vector<4x8x8xf32> to vector<8x8xf32>
    %c0_187 = arith.constant 0 : index
    %c17 = arith.constant 17 : index
    %c0_188 = arith.constant 0 : index
    %c0_189 = arith.constant 0 : index
    %161 = vector.load %arg4[%c0_187, %c17, %c0_188, %c0_189] : memref<1x49x8x8xf32, #tpu.memory_space<vmem>>, vector<1x1x8x8xf32>
    %162 = vector.shape_cast %161 : vector<1x1x8x8xf32> to vector<8x8xf32>
    %163 = vector.shape_cast %160 : vector<8x8xf32> to vector<1x1x8x8xf32>
    tpu.vector_store %arg4[%c0_187, %c17, %c0_188, %c0_189], %163 {strides = array<i32>} : memref<1x49x8x8xf32, #tpu.memory_space<vmem>>, vector<1x1x8x8xf32>,
    %c4_190 = arith.constant 4 : index
    %c0_191 = arith.constant 0 : index
    %c2_192 = arith.constant 2 : index
    %c0_193 = arith.constant 0 : index
    %164 = vector.load %arg6[%c4_190, %c0_191, %c2_192, %c0_193] : memref<7x4x14x8xf32, #tpu.memory_space<vmem>>, vector<1x4x8x8xf32>
    %165 = vector.shape_cast %164 : vector<1x4x8x8xf32> to vector<4x8x8xf32>
    %166 = arith.mulf %37, %165 : vector<4x8x8xf32>
    %cst_194 = arith.constant dense<0.000000e+00> : vector<8x8xf32>
    %167 = vector.multi_reduction <add>, %166, %cst_194 [0] : vector<4x8x8xf32> to vector<8x8xf32>
    %c0_195 = arith.constant 0 : index
    %c18 = arith.constant 18 : index
    %c0_196 = arith.constant 0 : index
    %c0_197 = arith.constant 0 : index
    %168 = vector.load %arg4[%c0_195, %c18, %c0_196, %c0_197] : memref<1x49x8x8xf32, #tpu.memory_space<vmem>>, vector<1x1x8x8xf32>
    %169 = vector.shape_cast %168 : vector<1x1x8x8xf32> to vector<8x8xf32>
    %170 = vector.shape_cast %167 : vector<8x8xf32> to vector<1x1x8x8xf32>
    tpu.vector_store %arg4[%c0_195, %c18, %c0_196, %c0_197], %170 {strides = array<i32>} : memref<1x49x8x8xf32, #tpu.memory_space<vmem>>, vector<1x1x8x8xf32>,
    %c5_198 = arith.constant 5 : index
    %c0_199 = arith.constant 0 : index
    %c2_200 = arith.constant 2 : index
    %c0_201 = arith.constant 0 : index
    %171 = vector.load %arg6[%c5_198, %c0_199, %c2_200, %c0_201] : memref<7x4x14x8xf32, #tpu.memory_space<vmem>>, vector<1x4x8x8xf32>
    %172 = vector.shape_cast %171 : vector<1x4x8x8xf32> to vector<4x8x8xf32>
    %173 = arith.mulf %37, %172 : vector<4x8x8xf32>
    %cst_202 = arith.constant dense<0.000000e+00> : vector<8x8xf32>
    %174 = vector.multi_reduction <add>, %173, %cst_202 [0] : vector<4x8x8xf32> to vector<8x8xf32>
    %c0_203 = arith.constant 0 : index
    %c19 = arith.constant 19 : index
    %c0_204 = arith.constant 0 : index
    %c0_205 = arith.constant 0 : index
    %175 = vector.load %arg4[%c0_203, %c19, %c0_204, %c0_205] : memref<1x49x8x8xf32, #tpu.memory_space<vmem>>, vector<1x1x8x8xf32>
    %176 = vector.shape_cast %175 : vector<1x1x8x8xf32> to vector<8x8xf32>
    %177 = vector.shape_cast %174 : vector<8x8xf32> to vector<1x1x8x8xf32>
    tpu.vector_store %arg4[%c0_203, %c19, %c0_204, %c0_205], %177 {strides = array<i32>} : memref<1x49x8x8xf32, #tpu.memory_space<vmem>>, vector<1x1x8x8xf32>,
    %c6_206 = arith.constant 6 : index
    %c0_207 = arith.constant 0 : index
    %c2_208 = arith.constant 2 : index
    %c0_209 = arith.constant 0 : index
    %178 = vector.load %arg6[%c6_206, %c0_207, %c2_208, %c0_209] : memref<7x4x14x8xf32, #tpu.memory_space<vmem>>, vector<1x4x8x8xf32>
    %179 = vector.shape_cast %178 : vector<1x4x8x8xf32> to vector<4x8x8xf32>
    %180 = arith.mulf %37, %179 : vector<4x8x8xf32>
    %cst_210 = arith.constant dense<0.000000e+00> : vector<8x8xf32>
    %181 = vector.multi_reduction <add>, %180, %cst_210 [0] : vector<4x8x8xf32> to vector<8x8xf32>
    %c0_211 = arith.constant 0 : index
    %c20 = arith.constant 20 : index
    %c0_212 = arith.constant 0 : index
    %c0_213 = arith.constant 0 : index
    %182 = vector.load %arg4[%c0_211, %c20, %c0_212, %c0_213] : memref<1x49x8x8xf32, #tpu.memory_space<vmem>>, vector<1x1x8x8xf32>
    %183 = vector.shape_cast %182 : vector<1x1x8x8xf32> to vector<8x8xf32>
    %184 = vector.shape_cast %181 : vector<8x8xf32> to vector<1x1x8x8xf32>
    tpu.vector_store %arg4[%c0_211, %c20, %c0_212, %c0_213], %184 {strides = array<i32>} : memref<1x49x8x8xf32, #tpu.memory_space<vmem>>, vector<1x1x8x8xf32>,
    %c0_214 = arith.constant 0 : index
    %c0_215 = arith.constant 0 : index
    %c3_216 = arith.constant 3 : index
    %c0_217 = arith.constant 0 : index
    %185 = vector.load %arg6[%c0_214, %c0_215, %c3_216, %c0_217] : memref<7x4x14x8xf32, #tpu.memory_space<vmem>>, vector<1x4x8x8xf32>
    %186 = vector.shape_cast %185 : vector<1x4x8x8xf32> to vector<4x8x8xf32>
    %187 = arith.mulf %37, %186 : vector<4x8x8xf32>
    %cst_218 = arith.constant dense<0.000000e+00> : vector<8x8xf32>
    %188 = vector.multi_reduction <add>, %187, %cst_218 [0] : vector<4x8x8xf32> to vector<8x8xf32>
    %c0_219 = arith.constant 0 : index
    %c21 = arith.constant 21 : index
    %c0_220 = arith.constant 0 : index
    %c0_221 = arith.constant 0 : index
    %189 = vector.load %arg4[%c0_219, %c21, %c0_220, %c0_221] : memref<1x49x8x8xf32, #tpu.memory_space<vmem>>, vector<1x1x8x8xf32>
    %190 = vector.shape_cast %189 : vector<1x1x8x8xf32> to vector<8x8xf32>
    %191 = vector.shape_cast %188 : vector<8x8xf32> to vector<1x1x8x8xf32>
    tpu.vector_store %arg4[%c0_219, %c21, %c0_220, %c0_221], %191 {strides = array<i32>} : memref<1x49x8x8xf32, #tpu.memory_space<vmem>>, vector<1x1x8x8xf32>,
    %c1_222 = arith.constant 1 : index
    %c0_223 = arith.constant 0 : index
    %c3_224 = arith.constant 3 : index
    %c0_225 = arith.constant 0 : index
    %192 = vector.load %arg6[%c1_222, %c0_223, %c3_224, %c0_225] : memref<7x4x14x8xf32, #tpu.memory_space<vmem>>, vector<1x4x8x8xf32>
    %193 = vector.shape_cast %192 : vector<1x4x8x8xf32> to vector<4x8x8xf32>
    %194 = arith.mulf %37, %193 : vector<4x8x8xf32>
    %cst_226 = arith.constant dense<0.000000e+00> : vector<8x8xf32>
    %195 = vector.multi_reduction <add>, %194, %cst_226 [0] : vector<4x8x8xf32> to vector<8x8xf32>
    %c0_227 = arith.constant 0 : index
    %c22 = arith.constant 22 : index
    %c0_228 = arith.constant 0 : index
    %c0_229 = arith.constant 0 : index
    %196 = vector.load %arg4[%c0_227, %c22, %c0_228, %c0_229] : memref<1x49x8x8xf32, #tpu.memory_space<vmem>>, vector<1x1x8x8xf32>
    %197 = vector.shape_cast %196 : vector<1x1x8x8xf32> to vector<8x8xf32>
    %198 = vector.shape_cast %195 : vector<8x8xf32> to vector<1x1x8x8xf32>
    tpu.vector_store %arg4[%c0_227, %c22, %c0_228, %c0_229], %198 {strides = array<i32>} : memref<1x49x8x8xf32, #tpu.memory_space<vmem>>, vector<1x1x8x8xf32>,
    %c2_230 = arith.constant 2 : index
    %c0_231 = arith.constant 0 : index
    %c3_232 = arith.constant 3 : index
    %c0_233 = arith.constant 0 : index
    %199 = vector.load %arg6[%c2_230, %c0_231, %c3_232, %c0_233] : memref<7x4x14x8xf32, #tpu.memory_space<vmem>>, vector<1x4x8x8xf32>
    %200 = vector.shape_cast %199 : vector<1x4x8x8xf32> to vector<4x8x8xf32>
    %201 = arith.mulf %37, %200 : vector<4x8x8xf32>
    %cst_234 = arith.constant dense<0.000000e+00> : vector<8x8xf32>
    %202 = vector.multi_reduction <add>, %201, %cst_234 [0] : vector<4x8x8xf32> to vector<8x8xf32>
    %c0_235 = arith.constant 0 : index
    %c23 = arith.constant 23 : index
    %c0_236 = arith.constant 0 : index
    %c0_237 = arith.constant 0 : index
    %203 = vector.load %arg4[%c0_235, %c23, %c0_236, %c0_237] : memref<1x49x8x8xf32, #tpu.memory_space<vmem>>, vector<1x1x8x8xf32>
    %204 = vector.shape_cast %203 : vector<1x1x8x8xf32> to vector<8x8xf32>
    %205 = vector.shape_cast %202 : vector<8x8xf32> to vector<1x1x8x8xf32>
    tpu.vector_store %arg4[%c0_235, %c23, %c0_236, %c0_237], %205 {strides = array<i32>} : memref<1x49x8x8xf32, #tpu.memory_space<vmem>>, vector<1x1x8x8xf32>,
    %c3_238 = arith.constant 3 : index
    %c0_239 = arith.constant 0 : index
    %c3_240 = arith.constant 3 : index
    %c0_241 = arith.constant 0 : index
    %206 = vector.load %arg6[%c3_238, %c0_239, %c3_240, %c0_241] : memref<7x4x14x8xf32, #tpu.memory_space<vmem>>, vector<1x4x8x8xf32>
    %207 = vector.shape_cast %206 : vector<1x4x8x8xf32> to vector<4x8x8xf32>
    %208 = arith.mulf %37, %207 : vector<4x8x8xf32>
    %cst_242 = arith.constant dense<0.000000e+00> : vector<8x8xf32>
    %209 = vector.multi_reduction <add>, %208, %cst_242 [0] : vector<4x8x8xf32> to vector<8x8xf32>
    %c0_243 = arith.constant 0 : index
    %c24 = arith.constant 24 : index
    %c0_244 = arith.constant 0 : index
    %c0_245 = arith.constant 0 : index
    %210 = vector.load %arg4[%c0_243, %c24, %c0_244, %c0_245] : memref<1x49x8x8xf32, #tpu.memory_space<vmem>>, vector<1x1x8x8xf32>
    %211 = vector.shape_cast %210 : vector<1x1x8x8xf32> to vector<8x8xf32>
    %212 = vector.shape_cast %209 : vector<8x8xf32> to vector<1x1x8x8xf32>
    tpu.vector_store %arg4[%c0_243, %c24, %c0_244, %c0_245], %212 {strides = array<i32>} : memref<1x49x8x8xf32, #tpu.memory_space<vmem>>, vector<1x1x8x8xf32>,
    %c4_246 = arith.constant 4 : index
    %c0_247 = arith.constant 0 : index
    %c3_248 = arith.constant 3 : index
    %c0_249 = arith.constant 0 : index
    %213 = vector.load %arg6[%c4_246, %c0_247, %c3_248, %c0_249] : memref<7x4x14x8xf32, #tpu.memory_space<vmem>>, vector<1x4x8x8xf32>
    %214 = vector.shape_cast %213 : vector<1x4x8x8xf32> to vector<4x8x8xf32>
    %215 = arith.mulf %37, %214 : vector<4x8x8xf32>
    %cst_250 = arith.constant dense<0.000000e+00> : vector<8x8xf32>
    %216 = vector.multi_reduction <add>, %215, %cst_250 [0] : vector<4x8x8xf32> to vector<8x8xf32>
    %c0_251 = arith.constant 0 : index
    %c25 = arith.constant 25 : index
    %c0_252 = arith.constant 0 : index
    %c0_253 = arith.constant 0 : index
    %217 = vector.load %arg4[%c0_251, %c25, %c0_252, %c0_253] : memref<1x49x8x8xf32, #tpu.memory_space<vmem>>, vector<1x1x8x8xf32>
    %218 = vector.shape_cast %217 : vector<1x1x8x8xf32> to vector<8x8xf32>
    %219 = vector.shape_cast %216 : vector<8x8xf32> to vector<1x1x8x8xf32>
    tpu.vector_store %arg4[%c0_251, %c25, %c0_252, %c0_253], %219 {strides = array<i32>} : memref<1x49x8x8xf32, #tpu.memory_space<vmem>>, vector<1x1x8x8xf32>,
    %c5_254 = arith.constant 5 : index
    %c0_255 = arith.constant 0 : index
    %c3_256 = arith.constant 3 : index
    %c0_257 = arith.constant 0 : index
    %220 = vector.load %arg6[%c5_254, %c0_255, %c3_256, %c0_257] : memref<7x4x14x8xf32, #tpu.memory_space<vmem>>, vector<1x4x8x8xf32>
    %221 = vector.shape_cast %220 : vector<1x4x8x8xf32> to vector<4x8x8xf32>
    %222 = arith.mulf %37, %221 : vector<4x8x8xf32>
    %cst_258 = arith.constant dense<0.000000e+00> : vector<8x8xf32>
    %223 = vector.multi_reduction <add>, %222, %cst_258 [0] : vector<4x8x8xf32> to vector<8x8xf32>
    %c0_259 = arith.constant 0 : index
    %c26 = arith.constant 26 : index
    %c0_260 = arith.constant 0 : index
    %c0_261 = arith.constant 0 : index
    %224 = vector.load %arg4[%c0_259, %c26, %c0_260, %c0_261] : memref<1x49x8x8xf32, #tpu.memory_space<vmem>>, vector<1x1x8x8xf32>
    %225 = vector.shape_cast %224 : vector<1x1x8x8xf32> to vector<8x8xf32>
    %226 = vector.shape_cast %223 : vector<8x8xf32> to vector<1x1x8x8xf32>
    tpu.vector_store %arg4[%c0_259, %c26, %c0_260, %c0_261], %226 {strides = array<i32>} : memref<1x49x8x8xf32, #tpu.memory_space<vmem>>, vector<1x1x8x8xf32>,
    %c6_262 = arith.constant 6 : index
    %c0_263 = arith.constant 0 : index
    %c3_264 = arith.constant 3 : index
    %c0_265 = arith.constant 0 : index
    %227 = vector.load %arg6[%c6_262, %c0_263, %c3_264, %c0_265] : memref<7x4x14x8xf32, #tpu.memory_space<vmem>>, vector<1x4x8x8xf32>
    %228 = vector.shape_cast %227 : vector<1x4x8x8xf32> to vector<4x8x8xf32>
    %229 = arith.mulf %37, %228 : vector<4x8x8xf32>
    %cst_266 = arith.constant dense<0.000000e+00> : vector<8x8xf32>
    %230 = vector.multi_reduction <add>, %229, %cst_266 [0] : vector<4x8x8xf32> to vector<8x8xf32>
    %c0_267 = arith.constant 0 : index
    %c27 = arith.constant 27 : index
    %c0_268 = arith.constant 0 : index
    %c0_269 = arith.constant 0 : index
    %231 = vector.load %arg4[%c0_267, %c27, %c0_268, %c0_269] : memref<1x49x8x8xf32, #tpu.memory_space<vmem>>, vector<1x1x8x8xf32>
    %232 = vector.shape_cast %231 : vector<1x1x8x8xf32> to vector<8x8xf32>
    %233 = vector.shape_cast %230 : vector<8x8xf32> to vector<1x1x8x8xf32>
    tpu.vector_store %arg4[%c0_267, %c27, %c0_268, %c0_269], %233 {strides = array<i32>} : memref<1x49x8x8xf32, #tpu.memory_space<vmem>>, vector<1x1x8x8xf32>,
    %c0_270 = arith.constant 0 : index
    %c0_271 = arith.constant 0 : index
    %c4_272 = arith.constant 4 : index
    %c0_273 = arith.constant 0 : index
    %234 = vector.load %arg6[%c0_270, %c0_271, %c4_272, %c0_273] : memref<7x4x14x8xf32, #tpu.memory_space<vmem>>, vector<1x4x8x8xf32>
    %235 = vector.shape_cast %234 : vector<1x4x8x8xf32> to vector<4x8x8xf32>
    %236 = arith.mulf %37, %235 : vector<4x8x8xf32>
    %cst_274 = arith.constant dense<0.000000e+00> : vector<8x8xf32>
    %237 = vector.multi_reduction <add>, %236, %cst_274 [0] : vector<4x8x8xf32> to vector<8x8xf32>
    %c0_275 = arith.constant 0 : index
    %c28 = arith.constant 28 : index
    %c0_276 = arith.constant 0 : index
    %c0_277 = arith.constant 0 : index
    %238 = vector.load %arg4[%c0_275, %c28, %c0_276, %c0_277] : memref<1x49x8x8xf32, #tpu.memory_space<vmem>>, vector<1x1x8x8xf32>
    %239 = vector.shape_cast %238 : vector<1x1x8x8xf32> to vector<8x8xf32>
    %240 = vector.shape_cast %237 : vector<8x8xf32> to vector<1x1x8x8xf32>
    tpu.vector_store %arg4[%c0_275, %c28, %c0_276, %c0_277], %240 {strides = array<i32>} : memref<1x49x8x8xf32, #tpu.memory_space<vmem>>, vector<1x1x8x8xf32>,
    %c1_278 = arith.constant 1 : index
    %c0_279 = arith.constant 0 : index
    %c4_280 = arith.constant 4 : index
    %c0_281 = arith.constant 0 : index
    %241 = vector.load %arg6[%c1_278, %c0_279, %c4_280, %c0_281] : memref<7x4x14x8xf32, #tpu.memory_space<vmem>>, vector<1x4x8x8xf32>
    %242 = vector.shape_cast %241 : vector<1x4x8x8xf32> to vector<4x8x8xf32>
    %243 = arith.mulf %37, %242 : vector<4x8x8xf32>
    %cst_282 = arith.constant dense<0.000000e+00> : vector<8x8xf32>
    %244 = vector.multi_reduction <add>, %243, %cst_282 [0] : vector<4x8x8xf32> to vector<8x8xf32>
    %c0_283 = arith.constant 0 : index
    %c29 = arith.constant 29 : index
    %c0_284 = arith.constant 0 : index
    %c0_285 = arith.constant 0 : index
    %245 = vector.load %arg4[%c0_283, %c29, %c0_284, %c0_285] : memref<1x49x8x8xf32, #tpu.memory_space<vmem>>, vector<1x1x8x8xf32>
    %246 = vector.shape_cast %245 : vector<1x1x8x8xf32> to vector<8x8xf32>
    %247 = vector.shape_cast %244 : vector<8x8xf32> to vector<1x1x8x8xf32>
    tpu.vector_store %arg4[%c0_283, %c29, %c0_284, %c0_285], %247 {strides = array<i32>} : memref<1x49x8x8xf32, #tpu.memory_space<vmem>>, vector<1x1x8x8xf32>,
    %c2_286 = arith.constant 2 : index
    %c0_287 = arith.constant 0 : index
    %c4_288 = arith.constant 4 : index
    %c0_289 = arith.constant 0 : index
    %248 = vector.load %arg6[%c2_286, %c0_287, %c4_288, %c0_289] : memref<7x4x14x8xf32, #tpu.memory_space<vmem>>, vector<1x4x8x8xf32>
    %249 = vector.shape_cast %248 : vector<1x4x8x8xf32> to vector<4x8x8xf32>
    %250 = arith.mulf %37, %249 : vector<4x8x8xf32>
    %cst_290 = arith.constant dense<0.000000e+00> : vector<8x8xf32>
    %251 = vector.multi_reduction <add>, %250, %cst_290 [0] : vector<4x8x8xf32> to vector<8x8xf32>
    %c0_291 = arith.constant 0 : index
    %c30 = arith.constant 30 : index
    %c0_292 = arith.constant 0 : index
    %c0_293 = arith.constant 0 : index
    %252 = vector.load %arg4[%c0_291, %c30, %c0_292, %c0_293] : memref<1x49x8x8xf32, #tpu.memory_space<vmem>>, vector<1x1x8x8xf32>
    %253 = vector.shape_cast %252 : vector<1x1x8x8xf32> to vector<8x8xf32>
    %254 = vector.shape_cast %251 : vector<8x8xf32> to vector<1x1x8x8xf32>
    tpu.vector_store %arg4[%c0_291, %c30, %c0_292, %c0_293], %254 {strides = array<i32>} : memref<1x49x8x8xf32, #tpu.memory_space<vmem>>, vector<1x1x8x8xf32>,
    %c3_294 = arith.constant 3 : index
    %c0_295 = arith.constant 0 : index
    %c4_296 = arith.constant 4 : index
    %c0_297 = arith.constant 0 : index
    %255 = vector.load %arg6[%c3_294, %c0_295, %c4_296, %c0_297] : memref<7x4x14x8xf32, #tpu.memory_space<vmem>>, vector<1x4x8x8xf32>
    %256 = vector.shape_cast %255 : vector<1x4x8x8xf32> to vector<4x8x8xf32>
    %257 = arith.mulf %37, %256 : vector<4x8x8xf32>
    %cst_298 = arith.constant dense<0.000000e+00> : vector<8x8xf32>
    %258 = vector.multi_reduction <add>, %257, %cst_298 [0] : vector<4x8x8xf32> to vector<8x8xf32>
    %c0_299 = arith.constant 0 : index
    %c31 = arith.constant 31 : index
    %c0_300 = arith.constant 0 : index
    %c0_301 = arith.constant 0 : index
    %259 = vector.load %arg4[%c0_299, %c31, %c0_300, %c0_301] : memref<1x49x8x8xf32, #tpu.memory_space<vmem>>, vector<1x1x8x8xf32>
    %260 = vector.shape_cast %259 : vector<1x1x8x8xf32> to vector<8x8xf32>
    %261 = vector.shape_cast %258 : vector<8x8xf32> to vector<1x1x8x8xf32>
    tpu.vector_store %arg4[%c0_299, %c31, %c0_300, %c0_301], %261 {strides = array<i32>} : memref<1x49x8x8xf32, #tpu.memory_space<vmem>>, vector<1x1x8x8xf32>,
    %c4_302 = arith.constant 4 : index
    %c0_303 = arith.constant 0 : index
    %c4_304 = arith.constant 4 : index
    %c0_305 = arith.constant 0 : index
    %262 = vector.load %arg6[%c4_302, %c0_303, %c4_304, %c0_305] : memref<7x4x14x8xf32, #tpu.memory_space<vmem>>, vector<1x4x8x8xf32>
    %263 = vector.shape_cast %262 : vector<1x4x8x8xf32> to vector<4x8x8xf32>
    %264 = arith.mulf %37, %263 : vector<4x8x8xf32>
    %cst_306 = arith.constant dense<0.000000e+00> : vector<8x8xf32>
    %265 = vector.multi_reduction <add>, %264, %cst_306 [0] : vector<4x8x8xf32> to vector<8x8xf32>
    %c0_307 = arith.constant 0 : index
    %c32 = arith.constant 32 : index
    %c0_308 = arith.constant 0 : index
    %c0_309 = arith.constant 0 : index
    %266 = vector.load %arg4[%c0_307, %c32, %c0_308, %c0_309] : memref<1x49x8x8xf32, #tpu.memory_space<vmem>>, vector<1x1x8x8xf32>
    %267 = vector.shape_cast %266 : vector<1x1x8x8xf32> to vector<8x8xf32>
    %268 = vector.shape_cast %265 : vector<8x8xf32> to vector<1x1x8x8xf32>
    tpu.vector_store %arg4[%c0_307, %c32, %c0_308, %c0_309], %268 {strides = array<i32>} : memref<1x49x8x8xf32, #tpu.memory_space<vmem>>, vector<1x1x8x8xf32>,
    %c5_310 = arith.constant 5 : index
    %c0_311 = arith.constant 0 : index
    %c4_312 = arith.constant 4 : index
    %c0_313 = arith.constant 0 : index
    %269 = vector.load %arg6[%c5_310, %c0_311, %c4_312, %c0_313] : memref<7x4x14x8xf32, #tpu.memory_space<vmem>>, vector<1x4x8x8xf32>
    %270 = vector.shape_cast %269 : vector<1x4x8x8xf32> to vector<4x8x8xf32>
    %271 = arith.mulf %37, %270 : vector<4x8x8xf32>
    %cst_314 = arith.constant dense<0.000000e+00> : vector<8x8xf32>
    %272 = vector.multi_reduction <add>, %271, %cst_314 [0] : vector<4x8x8xf32> to vector<8x8xf32>
    %c0_315 = arith.constant 0 : index
    %c33 = arith.constant 33 : index
    %c0_316 = arith.constant 0 : index
    %c0_317 = arith.constant 0 : index
    %273 = vector.load %arg4[%c0_315, %c33, %c0_316, %c0_317] : memref<1x49x8x8xf32, #tpu.memory_space<vmem>>, vector<1x1x8x8xf32>
    %274 = vector.shape_cast %273 : vector<1x1x8x8xf32> to vector<8x8xf32>
    %275 = vector.shape_cast %272 : vector<8x8xf32> to vector<1x1x8x8xf32>
    tpu.vector_store %arg4[%c0_315, %c33, %c0_316, %c0_317], %275 {strides = array<i32>} : memref<1x49x8x8xf32, #tpu.memory_space<vmem>>, vector<1x1x8x8xf32>,
    %c6_318 = arith.constant 6 : index
    %c0_319 = arith.constant 0 : index
    %c4_320 = arith.constant 4 : index
    %c0_321 = arith.constant 0 : index
    %276 = vector.load %arg6[%c6_318, %c0_319, %c4_320, %c0_321] : memref<7x4x14x8xf32, #tpu.memory_space<vmem>>, vector<1x4x8x8xf32>
    %277 = vector.shape_cast %276 : vector<1x4x8x8xf32> to vector<4x8x8xf32>
    %278 = arith.mulf %37, %277 : vector<4x8x8xf32>
    %cst_322 = arith.constant dense<0.000000e+00> : vector<8x8xf32>
    %279 = vector.multi_reduction <add>, %278, %cst_322 [0] : vector<4x8x8xf32> to vector<8x8xf32>
    %c0_323 = arith.constant 0 : index
    %c34 = arith.constant 34 : index
    %c0_324 = arith.constant 0 : index
    %c0_325 = arith.constant 0 : index
    %280 = vector.load %arg4[%c0_323, %c34, %c0_324, %c0_325] : memref<1x49x8x8xf32, #tpu.memory_space<vmem>>, vector<1x1x8x8xf32>
    %281 = vector.shape_cast %280 : vector<1x1x8x8xf32> to vector<8x8xf32>
    %282 = vector.shape_cast %279 : vector<8x8xf32> to vector<1x1x8x8xf32>
    tpu.vector_store %arg4[%c0_323, %c34, %c0_324, %c0_325], %282 {strides = array<i32>} : memref<1x49x8x8xf32, #tpu.memory_space<vmem>>, vector<1x1x8x8xf32>,
    %c0_326 = arith.constant 0 : index
    %c0_327 = arith.constant 0 : index
    %c5_328 = arith.constant 5 : index
    %c0_329 = arith.constant 0 : index
    %283 = vector.load %arg6[%c0_326, %c0_327, %c5_328, %c0_329] : memref<7x4x14x8xf32, #tpu.memory_space<vmem>>, vector<1x4x8x8xf32>
    %284 = vector.shape_cast %283 : vector<1x4x8x8xf32> to vector<4x8x8xf32>
    %285 = arith.mulf %37, %284 : vector<4x8x8xf32>
    %cst_330 = arith.constant dense<0.000000e+00> : vector<8x8xf32>
    %286 = vector.multi_reduction <add>, %285, %cst_330 [0] : vector<4x8x8xf32> to vector<8x8xf32>
    %c0_331 = arith.constant 0 : index
    %c35 = arith.constant 35 : index
    %c0_332 = arith.constant 0 : index
    %c0_333 = arith.constant 0 : index
    %287 = vector.load %arg4[%c0_331, %c35, %c0_332, %c0_333] : memref<1x49x8x8xf32, #tpu.memory_space<vmem>>, vector<1x1x8x8xf32>
    %288 = vector.shape_cast %287 : vector<1x1x8x8xf32> to vector<8x8xf32>
    %289 = vector.shape_cast %286 : vector<8x8xf32> to vector<1x1x8x8xf32>
    tpu.vector_store %arg4[%c0_331, %c35, %c0_332, %c0_333], %289 {strides = array<i32>} : memref<1x49x8x8xf32, #tpu.memory_space<vmem>>, vector<1x1x8x8xf32>,
    %c1_334 = arith.constant 1 : index
    %c0_335 = arith.constant 0 : index
    %c5_336 = arith.constant 5 : index
    %c0_337 = arith.constant 0 : index
    %290 = vector.load %arg6[%c1_334, %c0_335, %c5_336, %c0_337] : memref<7x4x14x8xf32, #tpu.memory_space<vmem>>, vector<1x4x8x8xf32>
    %291 = vector.shape_cast %290 : vector<1x4x8x8xf32> to vector<4x8x8xf32>
    %292 = arith.mulf %37, %291 : vector<4x8x8xf32>
    %cst_338 = arith.constant dense<0.000000e+00> : vector<8x8xf32>
    %293 = vector.multi_reduction <add>, %292, %cst_338 [0] : vector<4x8x8xf32> to vector<8x8xf32>
    %c0_339 = arith.constant 0 : index
    %c36 = arith.constant 36 : index
    %c0_340 = arith.constant 0 : index
    %c0_341 = arith.constant 0 : index
    %294 = vector.load %arg4[%c0_339, %c36, %c0_340, %c0_341] : memref<1x49x8x8xf32, #tpu.memory_space<vmem>>, vector<1x1x8x8xf32>
    %295 = vector.shape_cast %294 : vector<1x1x8x8xf32> to vector<8x8xf32>
    %296 = vector.shape_cast %293 : vector<8x8xf32> to vector<1x1x8x8xf32>
    tpu.vector_store %arg4[%c0_339, %c36, %c0_340, %c0_341], %296 {strides = array<i32>} : memref<1x49x8x8xf32, #tpu.memory_space<vmem>>, vector<1x1x8x8xf32>,
    %c2_342 = arith.constant 2 : index
    %c0_343 = arith.constant 0 : index
    %c5_344 = arith.constant 5 : index
    %c0_345 = arith.constant 0 : index
    %297 = vector.load %arg6[%c2_342, %c0_343, %c5_344, %c0_345] : memref<7x4x14x8xf32, #tpu.memory_space<vmem>>, vector<1x4x8x8xf32>
    %298 = vector.shape_cast %297 : vector<1x4x8x8xf32> to vector<4x8x8xf32>
    %299 = arith.mulf %37, %298 : vector<4x8x8xf32>
    %cst_346 = arith.constant dense<0.000000e+00> : vector<8x8xf32>
    %300 = vector.multi_reduction <add>, %299, %cst_346 [0] : vector<4x8x8xf32> to vector<8x8xf32>
    %c0_347 = arith.constant 0 : index
    %c37 = arith.constant 37 : index
    %c0_348 = arith.constant 0 : index
    %c0_349 = arith.constant 0 : index
    %301 = vector.load %arg4[%c0_347, %c37, %c0_348, %c0_349] : memref<1x49x8x8xf32, #tpu.memory_space<vmem>>, vector<1x1x8x8xf32>
    %302 = vector.shape_cast %301 : vector<1x1x8x8xf32> to vector<8x8xf32>
    %303 = vector.shape_cast %300 : vector<8x8xf32> to vector<1x1x8x8xf32>
    tpu.vector_store %arg4[%c0_347, %c37, %c0_348, %c0_349], %303 {strides = array<i32>} : memref<1x49x8x8xf32, #tpu.memory_space<vmem>>, vector<1x1x8x8xf32>,
    %c3_350 = arith.constant 3 : index
    %c0_351 = arith.constant 0 : index
    %c5_352 = arith.constant 5 : index
    %c0_353 = arith.constant 0 : index
    %304 = vector.load %arg6[%c3_350, %c0_351, %c5_352, %c0_353] : memref<7x4x14x8xf32, #tpu.memory_space<vmem>>, vector<1x4x8x8xf32>
    %305 = vector.shape_cast %304 : vector<1x4x8x8xf32> to vector<4x8x8xf32>
    %306 = arith.mulf %37, %305 : vector<4x8x8xf32>
    %cst_354 = arith.constant dense<0.000000e+00> : vector<8x8xf32>
    %307 = vector.multi_reduction <add>, %306, %cst_354 [0] : vector<4x8x8xf32> to vector<8x8xf32>
    %c0_355 = arith.constant 0 : index
    %c38 = arith.constant 38 : index
    %c0_356 = arith.constant 0 : index
    %c0_357 = arith.constant 0 : index
    %308 = vector.load %arg4[%c0_355, %c38, %c0_356, %c0_357] : memref<1x49x8x8xf32, #tpu.memory_space<vmem>>, vector<1x1x8x8xf32>
    %309 = vector.shape_cast %308 : vector<1x1x8x8xf32> to vector<8x8xf32>
    %310 = vector.shape_cast %307 : vector<8x8xf32> to vector<1x1x8x8xf32>
    tpu.vector_store %arg4[%c0_355, %c38, %c0_356, %c0_357], %310 {strides = array<i32>} : memref<1x49x8x8xf32, #tpu.memory_space<vmem>>, vector<1x1x8x8xf32>,
    %c4_358 = arith.constant 4 : index
    %c0_359 = arith.constant 0 : index
    %c5_360 = arith.constant 5 : index
    %c0_361 = arith.constant 0 : index
    %311 = vector.load %arg6[%c4_358, %c0_359, %c5_360, %c0_361] : memref<7x4x14x8xf32, #tpu.memory_space<vmem>>, vector<1x4x8x8xf32>
    %312 = vector.shape_cast %311 : vector<1x4x8x8xf32> to vector<4x8x8xf32>
    %313 = arith.mulf %37, %312 : vector<4x8x8xf32>
    %cst_362 = arith.constant dense<0.000000e+00> : vector<8x8xf32>
    %314 = vector.multi_reduction <add>, %313, %cst_362 [0] : vector<4x8x8xf32> to vector<8x8xf32>
    %c0_363 = arith.constant 0 : index
    %c39 = arith.constant 39 : index
    %c0_364 = arith.constant 0 : index
    %c0_365 = arith.constant 0 : index
    %315 = vector.load %arg4[%c0_363, %c39, %c0_364, %c0_365] : memref<1x49x8x8xf32, #tpu.memory_space<vmem>>, vector<1x1x8x8xf32>
    %316 = vector.shape_cast %315 : vector<1x1x8x8xf32> to vector<8x8xf32>
    %317 = vector.shape_cast %314 : vector<8x8xf32> to vector<1x1x8x8xf32>
    tpu.vector_store %arg4[%c0_363, %c39, %c0_364, %c0_365], %317 {strides = array<i32>} : memref<1x49x8x8xf32, #tpu.memory_space<vmem>>, vector<1x1x8x8xf32>,
    %c5_366 = arith.constant 5 : index
    %c0_367 = arith.constant 0 : index
    %c5_368 = arith.constant 5 : index
    %c0_369 = arith.constant 0 : index
    %318 = vector.load %arg6[%c5_366, %c0_367, %c5_368, %c0_369] : memref<7x4x14x8xf32, #tpu.memory_space<vmem>>, vector<1x4x8x8xf32>
    %319 = vector.shape_cast %318 : vector<1x4x8x8xf32> to vector<4x8x8xf32>
    %320 = arith.mulf %37, %319 : vector<4x8x8xf32>
    %cst_370 = arith.constant dense<0.000000e+00> : vector<8x8xf32>
    %321 = vector.multi_reduction <add>, %320, %cst_370 [0] : vector<4x8x8xf32> to vector<8x8xf32>
    %c0_371 = arith.constant 0 : index
    %c40 = arith.constant 40 : index
    %c0_372 = arith.constant 0 : index
    %c0_373 = arith.constant 0 : index
    %322 = vector.load %arg4[%c0_371, %c40, %c0_372, %c0_373] : memref<1x49x8x8xf32, #tpu.memory_space<vmem>>, vector<1x1x8x8xf32>
    %323 = vector.shape_cast %322 : vector<1x1x8x8xf32> to vector<8x8xf32>
    %324 = vector.shape_cast %321 : vector<8x8xf32> to vector<1x1x8x8xf32>
    tpu.vector_store %arg4[%c0_371, %c40, %c0_372, %c0_373], %324 {strides = array<i32>} : memref<1x49x8x8xf32, #tpu.memory_space<vmem>>, vector<1x1x8x8xf32>,
    %c6_374 = arith.constant 6 : index
    %c0_375 = arith.constant 0 : index
    %c5_376 = arith.constant 5 : index
    %c0_377 = arith.constant 0 : index
    %325 = vector.load %arg6[%c6_374, %c0_375, %c5_376, %c0_377] : memref<7x4x14x8xf32, #tpu.memory_space<vmem>>, vector<1x4x8x8xf32>
    %326 = vector.shape_cast %325 : vector<1x4x8x8xf32> to vector<4x8x8xf32>
    %327 = arith.mulf %37, %326 : vector<4x8x8xf32>
    %cst_378 = arith.constant dense<0.000000e+00> : vector<8x8xf32>
    %328 = vector.multi_reduction <add>, %327, %cst_378 [0] : vector<4x8x8xf32> to vector<8x8xf32>
    %c0_379 = arith.constant 0 : index
    %c41 = arith.constant 41 : index
    %c0_380 = arith.constant 0 : index
    %c0_381 = arith.constant 0 : index
    %329 = vector.load %arg4[%c0_379, %c41, %c0_380, %c0_381] : memref<1x49x8x8xf32, #tpu.memory_space<vmem>>, vector<1x1x8x8xf32>
    %330 = vector.shape_cast %329 : vector<1x1x8x8xf32> to vector<8x8xf32>
    %331 = vector.shape_cast %328 : vector<8x8xf32> to vector<1x1x8x8xf32>
    tpu.vector_store %arg4[%c0_379, %c41, %c0_380, %c0_381], %331 {strides = array<i32>} : memref<1x49x8x8xf32, #tpu.memory_space<vmem>>, vector<1x1x8x8xf32>,
    %c0_382 = arith.constant 0 : index
    %c0_383 = arith.constant 0 : index
    %c6_384 = arith.constant 6 : index
    %c0_385 = arith.constant 0 : index
    %332 = vector.load %arg6[%c0_382, %c0_383, %c6_384, %c0_385] : memref<7x4x14x8xf32, #tpu.memory_space<vmem>>, vector<1x4x8x8xf32>
    %333 = vector.shape_cast %332 : vector<1x4x8x8xf32> to vector<4x8x8xf32>
    %334 = arith.mulf %37, %333 : vector<4x8x8xf32>
    %cst_386 = arith.constant dense<0.000000e+00> : vector<8x8xf32>
    %335 = vector.multi_reduction <add>, %334, %cst_386 [0] : vector<4x8x8xf32> to vector<8x8xf32>
    %c0_387 = arith.constant 0 : index
    %c42 = arith.constant 42 : index
    %c0_388 = arith.constant 0 : index
    %c0_389 = arith.constant 0 : index
    %336 = vector.load %arg4[%c0_387, %c42, %c0_388, %c0_389] : memref<1x49x8x8xf32, #tpu.memory_space<vmem>>, vector<1x1x8x8xf32>
    %337 = vector.shape_cast %336 : vector<1x1x8x8xf32> to vector<8x8xf32>
    %338 = vector.shape_cast %335 : vector<8x8xf32> to vector<1x1x8x8xf32>
    tpu.vector_store %arg4[%c0_387, %c42, %c0_388, %c0_389], %338 {strides = array<i32>} : memref<1x49x8x8xf32, #tpu.memory_space<vmem>>, vector<1x1x8x8xf32>,
    %c1_390 = arith.constant 1 : index
    %c0_391 = arith.constant 0 : index
    %c6_392 = arith.constant 6 : index
    %c0_393 = arith.constant 0 : index
    %339 = vector.load %arg6[%c1_390, %c0_391, %c6_392, %c0_393] : memref<7x4x14x8xf32, #tpu.memory_space<vmem>>, vector<1x4x8x8xf32>
    %340 = vector.shape_cast %339 : vector<1x4x8x8xf32> to vector<4x8x8xf32>
    %341 = arith.mulf %37, %340 : vector<4x8x8xf32>
    %cst_394 = arith.constant dense<0.000000e+00> : vector<8x8xf32>
    %342 = vector.multi_reduction <add>, %341, %cst_394 [0] : vector<4x8x8xf32> to vector<8x8xf32>
    %c0_395 = arith.constant 0 : index
    %c43 = arith.constant 43 : index
    %c0_396 = arith.constant 0 : index
    %c0_397 = arith.constant 0 : index
    %343 = vector.load %arg4[%c0_395, %c43, %c0_396, %c0_397] : memref<1x49x8x8xf32, #tpu.memory_space<vmem>>, vector<1x1x8x8xf32>
    %344 = vector.shape_cast %343 : vector<1x1x8x8xf32> to vector<8x8xf32>
    %345 = vector.shape_cast %342 : vector<8x8xf32> to vector<1x1x8x8xf32>
    tpu.vector_store %arg4[%c0_395, %c43, %c0_396, %c0_397], %345 {strides = array<i32>} : memref<1x49x8x8xf32, #tpu.memory_space<vmem>>, vector<1x1x8x8xf32>,
    %c2_398 = arith.constant 2 : index
    %c0_399 = arith.constant 0 : index
    %c6_400 = arith.constant 6 : index
    %c0_401 = arith.constant 0 : index
    %346 = vector.load %arg6[%c2_398, %c0_399, %c6_400, %c0_401] : memref<7x4x14x8xf32, #tpu.memory_space<vmem>>, vector<1x4x8x8xf32>
    %347 = vector.shape_cast %346 : vector<1x4x8x8xf32> to vector<4x8x8xf32>
    %348 = arith.mulf %37, %347 : vector<4x8x8xf32>
    %cst_402 = arith.constant dense<0.000000e+00> : vector<8x8xf32>
    %349 = vector.multi_reduction <add>, %348, %cst_402 [0] : vector<4x8x8xf32> to vector<8x8xf32>
    %c0_403 = arith.constant 0 : index
    %c44 = arith.constant 44 : index
    %c0_404 = arith.constant 0 : index
    %c0_405 = arith.constant 0 : index
    %350 = vector.load %arg4[%c0_403, %c44, %c0_404, %c0_405] : memref<1x49x8x8xf32, #tpu.memory_space<vmem>>, vector<1x1x8x8xf32>
    %351 = vector.shape_cast %350 : vector<1x1x8x8xf32> to vector<8x8xf32>
    %352 = vector.shape_cast %349 : vector<8x8xf32> to vector<1x1x8x8xf32>
    tpu.vector_store %arg4[%c0_403, %c44, %c0_404, %c0_405], %352 {strides = array<i32>} : memref<1x49x8x8xf32, #tpu.memory_space<vmem>>, vector<1x1x8x8xf32>,
    %c3_406 = arith.constant 3 : index
    %c0_407 = arith.constant 0 : index
    %c6_408 = arith.constant 6 : index
    %c0_409 = arith.constant 0 : index
    %353 = vector.load %arg6[%c3_406, %c0_407, %c6_408, %c0_409] : memref<7x4x14x8xf32, #tpu.memory_space<vmem>>, vector<1x4x8x8xf32>
    %354 = vector.shape_cast %353 : vector<1x4x8x8xf32> to vector<4x8x8xf32>
    %355 = arith.mulf %37, %354 : vector<4x8x8xf32>
    %cst_410 = arith.constant dense<0.000000e+00> : vector<8x8xf32>
    %356 = vector.multi_reduction <add>, %355, %cst_410 [0] : vector<4x8x8xf32> to vector<8x8xf32>
    %c0_411 = arith.constant 0 : index
    %c45 = arith.constant 45 : index
    %c0_412 = arith.constant 0 : index
    %c0_413 = arith.constant 0 : index
    %357 = vector.load %arg4[%c0_411, %c45, %c0_412, %c0_413] : memref<1x49x8x8xf32, #tpu.memory_space<vmem>>, vector<1x1x8x8xf32>
    %358 = vector.shape_cast %357 : vector<1x1x8x8xf32> to vector<8x8xf32>
    %359 = vector.shape_cast %356 : vector<8x8xf32> to vector<1x1x8x8xf32>
    tpu.vector_store %arg4[%c0_411, %c45, %c0_412, %c0_413], %359 {strides = array<i32>} : memref<1x49x8x8xf32, #tpu.memory_space<vmem>>, vector<1x1x8x8xf32>,
    %c4_414 = arith.constant 4 : index
    %c0_415 = arith.constant 0 : index
    %c6_416 = arith.constant 6 : index
    %c0_417 = arith.constant 0 : index
    %360 = vector.load %arg6[%c4_414, %c0_415, %c6_416, %c0_417] : memref<7x4x14x8xf32, #tpu.memory_space<vmem>>, vector<1x4x8x8xf32>
    %361 = vector.shape_cast %360 : vector<1x4x8x8xf32> to vector<4x8x8xf32>
    %362 = arith.mulf %37, %361 : vector<4x8x8xf32>
    %cst_418 = arith.constant dense<0.000000e+00> : vector<8x8xf32>
    %363 = vector.multi_reduction <add>, %362, %cst_418 [0] : vector<4x8x8xf32> to vector<8x8xf32>
    %c0_419 = arith.constant 0 : index
    %c46 = arith.constant 46 : index
    %c0_420 = arith.constant 0 : index
    %c0_421 = arith.constant 0 : index
    %364 = vector.load %arg4[%c0_419, %c46, %c0_420, %c0_421] : memref<1x49x8x8xf32, #tpu.memory_space<vmem>>, vector<1x1x8x8xf32>
    %365 = vector.shape_cast %364 : vector<1x1x8x8xf32> to vector<8x8xf32>
    %366 = vector.shape_cast %363 : vector<8x8xf32> to vector<1x1x8x8xf32>
    tpu.vector_store %arg4[%c0_419, %c46, %c0_420, %c0_421], %366 {strides = array<i32>} : memref<1x49x8x8xf32, #tpu.memory_space<vmem>>, vector<1x1x8x8xf32>,
    %c5_422 = arith.constant 5 : index
    %c0_423 = arith.constant 0 : index
    %c6_424 = arith.constant 6 : index
    %c0_425 = arith.constant 0 : index
    %367 = vector.load %arg6[%c5_422, %c0_423, %c6_424, %c0_425] : memref<7x4x14x8xf32, #tpu.memory_space<vmem>>, vector<1x4x8x8xf32>
    %368 = vector.shape_cast %367 : vector<1x4x8x8xf32> to vector<4x8x8xf32>
    %369 = arith.mulf %37, %368 : vector<4x8x8xf32>
    %cst_426 = arith.constant dense<0.000000e+00> : vector<8x8xf32>
    %370 = vector.multi_reduction <add>, %369, %cst_426 [0] : vector<4x8x8xf32> to vector<8x8xf32>
    %c0_427 = arith.constant 0 : index
    %c47 = arith.constant 47 : index
    %c0_428 = arith.constant 0 : index
    %c0_429 = arith.constant 0 : index
    %371 = vector.load %arg4[%c0_427, %c47, %c0_428, %c0_429] : memref<1x49x8x8xf32, #tpu.memory_space<vmem>>, vector<1x1x8x8xf32>
    %372 = vector.shape_cast %371 : vector<1x1x8x8xf32> to vector<8x8xf32>
    %373 = vector.shape_cast %370 : vector<8x8xf32> to vector<1x1x8x8xf32>
    tpu.vector_store %arg4[%c0_427, %c47, %c0_428, %c0_429], %373 {strides = array<i32>} : memref<1x49x8x8xf32, #tpu.memory_space<vmem>>, vector<1x1x8x8xf32>,
    %c6_430 = arith.constant 6 : index
    %c0_431 = arith.constant 0 : index
    %c6_432 = arith.constant 6 : index
    %c0_433 = arith.constant 0 : index
    %374 = vector.load %arg6[%c6_430, %c0_431, %c6_432, %c0_433] : memref<7x4x14x8xf32, #tpu.memory_space<vmem>>, vector<1x4x8x8xf32>
    %375 = vector.shape_cast %374 : vector<1x4x8x8xf32> to vector<4x8x8xf32>
    %376 = arith.mulf %37, %375 : vector<4x8x8xf32>
    %cst_434 = arith.constant dense<0.000000e+00> : vector<8x8xf32>
    %377 = vector.multi_reduction <add>, %376, %cst_434 [0] : vector<4x8x8xf32> to vector<8x8xf32>
    %c0_435 = arith.constant 0 : index
    %c48 = arith.constant 48 : index
    %c0_436 = arith.constant 0 : index
    %c0_437 = arith.constant 0 : index
    %378 = vector.load %arg4[%c0_435, %c48, %c0_436, %c0_437] : memref<1x49x8x8xf32, #tpu.memory_space<vmem>>, vector<1x1x8x8xf32>
    %379 = vector.shape_cast %378 : vector<1x1x8x8xf32> to vector<8x8xf32>
    %380 = vector.shape_cast %377 : vector<8x8xf32> to vector<1x1x8x8xf32>
    tpu.vector_store %arg4[%c0_435, %c48, %c0_436, %c0_437], %380 {strides = array<i32>} : memref<1x49x8x8xf32, #tpu.memory_space<vmem>>, vector<1x1x8x8xf32>,
    return
  }
  func.func @transform_0(%arg0: i32, %arg1: i32) -> (i32, i32, i32, i32) {
    %c0_i32 = arith.constant 0 : i32
    %c0_i32_0 = arith.constant 0 : i32
    %c0_i32_1 = arith.constant 0 : i32
    return %arg0, %c0_i32, %arg1, %c0_i32_0 : i32, i32, i32, i32
  }
  func.func @transform_1(%arg0: i32, %arg1: i32) -> (i32, i32, i32, i32) {
    %c0_i32 = arith.constant 0 : i32
    %c0_i32_0 = arith.constant 0 : i32
    %c0_i32_1 = arith.constant 0 : i32
    %c0_i32_2 = arith.constant 0 : i32
    return %arg0, %c0_i32, %c0_i32_0, %c0_i32_1 : i32, i32, i32, i32
  }
  func.func @transform_2(%arg0: i32, %arg1: i32) -> (i32, i32, i32, i32) {
    %c0_i32 = arith.constant 0 : i32
    %c0_i32_0 = arith.constant 0 : i32
    %c0_i32_1 = arith.constant 0 : i32
    return %arg0, %c0_i32, %arg1, %c0_i32_0 : i32, i32, i32, i32
  }
}

</mosaic_0001>

<bundles_post_ra>
// kernel: module_correlation.1
= control target key start
LH: loop header
LB: loop body
LE: loop exit
PB: predicated region body
PF: predicated region fallthrough
CT: control target
= control target key end

     0   :  { %s1531_s9 = smov 0   ;;  %s1533_s10 = smov 0   ;;  %s2339_s0 = inlined_call_operand.vmem [shape: f32[2,4,8,8], index: 0, kind: input, shape index: {}]   ;;  %s2340_s1 = inlined_call_operand.vmem [shape: f32[2,4,8,8], index: 1, kind: input, shape index: {}]   ;;  %s2341_s2 = inlined_call_operand.vmem [shape: f32[2,49,8,8], index: 2, kind: output, shape index: {}]  }
   0x1   :  { %s1535_s11 = smov 0  }
   0x2 LB: > { %s24_s12 = sadd.s32 1, %s1502_s10  ;;  %p1393_p0 = scmp.ge.s32.totalorder %s1506_s11, 1  ;;  %s1506_s11 = sphi %s1535_s11, %s12_s11   ;;  %s1502_s10 = sphi %s1533_s10, %s2343_s10   ;;  %s1498_s9 = sphi %s1531_s9, %s2342_s9  }
   0x3   : > { %p26_p1 = scmp.ge.s32.totalorder %s24_s12, 2  ;;  %p141_p2 = scmp.lt.s32.totalorder %s1506_s11, 3 }
   0x5   : > { %s2345_s12 = smov (%p26_p1, %s24_s12), 0  ;;  %p142_p3 = pnand %p1393_p0, %p141_p2 }
   0x6   : > { %p174_p4 = scmp.lt.s32.totalorder (!%p142_p3), %s1498_s9, 1  ;;  %s1509_s17 = smov (!%p142_p3), 3  }
   0x7   : > { %145 = sbr.rel (%p142_p3) target bundleno = 406 (0x196), region = 28  ;;  %s1510_s21 = smov (!%p142_p3), 127  }
   0x8   : > { %s1511_s23 = smov (!%p142_p3), 126   ;;  %s1512_s27 = smov (!%p142_p3), 125  }
   0x9   : > { %s1513_s28 = smov (!%p142_p3), 124   ;;  %s1514_s29 = smov (!%p142_p3), 123  }
   0xa   : > { %s1515_s30 = smov (!%p142_p3), 122  }
   0xc   : > { %vm195_vm0 = vcmask 113664   ;;  %vm197_vm1 = vcmask 111616   ;;  %v1508_v0 = vmov 0.0   ;;  %s2347_s9 = smov (!%p174_p4, %s1498_s9), 1  ;;  %vm225_vm2 = vcmask 89112  }
   0xd   : > { %196 = vst.msk [vmem:[#allocation2] sm:$0xff] %vm195_vm0, %v1508_v0  ;;  %s1449_s13 = sshll.u32 %s2347_s9, 5  ;;  %vm238_vm3 = vcmask 64512   ;;  %vm240_vm4 = vcmask 62464   ;;  %s1451_s22 = smul.u32 392, %s2347_s9 }
   0xe   : > { %198 = vst.msk [vmem:[#allocation2 + $0x8] sm:$0x3f] %vm197_vm1, %v1508_v0  ;;  %s186_s16 = scalar_lea.vmem %s2340_s1, %s1449_s13  ;;  %s181_s20 = scalar_lea.vmem %s2339_s0, %s1449_s13 }
   0xf   : > { %199 = vst.msk [vmem:[#allocation2 + $0x10] sm:$0xff] %vm195_vm0, %v1508_v0  ;;  %v205_v1 = vld [vmem:[%s186_s16] sm:$0xff]  ;;  %v207_v2 = vld [vmem:[%s186_s16 + $0x10] sm:$0xff]  ;;  %v206_v3 = vld [vmem:[%s186_s16 + $0x8] sm:$0xff]  ;;  %s1676_s26 = scalar_lea.vmem %s2341_s2, %s1451_s22 }
  0x10   : > { %200 = vst.msk [vmem:[#allocation2 + $0x18] sm:$0x3f] %vm197_vm1, %v1508_v0  ;;  %213 = vrot.lane.b32.xlu0 %v205_v1, %s1509_s17  ;;  %217 = vrot.lane.b32.xlu1 %v207_v2, %s1509_s17  ;;  %v208_v4 = vld [vmem:[%s186_s16 + $0x18] sm:$0xff]  ;;  %v454_v12 = vld [vmem:[%s181_s20] sm:$0xff] }
  0x11   : > { %201 = vst.msk [vmem:[#allocation2 + $0x20] sm:$0xff] %vm195_vm0, %v1508_v0  ;;  %v1586_v14 = vmul.f32 0.25, %v454_v12  ;;  %v456_v15 = vld [vmem:[%s181_s20 + $0x10] sm:$0xff]  ;;  %v455_v18 = vld [vmem:[%s181_s20 + $0x8] sm:$0xff]  ;;  %v457_v20 = vld [vmem:[%s181_s20 + $0x18] sm:$0xff] }
  0x12   : > { %202 = vst.msk [vmem:[#allocation2 + $0x28] sm:$0x3f] %vm197_vm1, %v1508_v0  ;;  %v1600_v21 = vmul.f32 0.25, %v456_v15  ;;  %v1613_v28 = vmul.f32 0.25, %v455_v18  ;;  %v1620_v35 = vmul.f32 0.25, %v457_v20 }
  0x13   : > { %203 = vst.msk [vmem:[#allocation2 + $0x30] sm:$0xff] %vm195_vm0, %v1508_v0 }
  0x14   : > { %204 = vst.msk [vmem:[#allocation2 + $0x38] sm:$0x3f] %vm197_vm1, %v1508_v0 }
  0x18   : > { %215 = vrot.lane.b32.xlu0 %v206_v3, %s1509_s17  ;;  %219 = vrot.lane.b32.xlu1 %v208_v4, %s1509_s17 }
  0x82   : > { %v214_v5 = vpop.permute.xlu0 %213  ;;  %v218_v6 = vpop.permute.xlu1 %217 }
  0x83   : > { %226 = vst.msk [vmem:[#allocation2 + $0x3] sm:$0xff] %vm225_vm2, %v214_v5 }
  0x84   : > { %228 = vst.msk [vmem:[#allocation2 + $0x23] sm:$0xff] %vm225_vm2, %v218_v6 }
  0x8a   : > { %v216_v7 = vpop.permute.xlu0 %215  ;;  %v1568_v8 = vld [vmem:[#allocation2] sm:$0xff]  ;;  %v220_v9 = vpop.permute.xlu1 %219  ;;  %v1573_v10 = vld [vmem:[#allocation2 + $0x8] sm:$0x3f] }
  0x8b   : > { %227 = vst.msk [vmem:[#allocation2 + $0x13] sm:$0xff] %vm225_vm2, %v216_v7  ;;  %256 = vrot.lane.b32.xlu2 %v1568_v8, %s1510_s21  ;;  %v1577_v11 = vld [vmem:[#allocation2 + $0x20] sm:$0xff]  ;;  %v1580_v13 = vld [vmem:[#allocation2 + $0x28] sm:$0x3f] }
  0x8c   : > { %239 = vst.msk [vmem:[#allocation3] sm:$0xff] %vm238_vm3, %v1568_v8 }
  0x8d   : > { %229 = vst.msk [vmem:[#allocation2 + $0x33] sm:$0xff] %vm225_vm2, %v220_v9 }
  0x8e   : > { %241 = vst.msk [vmem:[#allocation3 + $0x8] sm:$0x3f] %vm240_vm4, %v1573_v10 }
  0x8f   : > { %244 = vst.msk [vmem:[#allocation3 + $0x20] sm:$0xff] %vm238_vm3, %v1577_v11 }
  0x90   : > { %245 = vst.msk [vmem:[#allocation3 + $0x28] sm:$0x3f] %vm240_vm4, %v1580_v13 }
  0x92   : > { %v1590_v16 = vld [vmem:[#allocation2 + $0x18] sm:$0x3f]  ;;  %v1592_v17 = vld [vmem:[#allocation2 + $0x10] sm:$0xff] }
  0x93   : > { %v462_v19 = vld [vmem:[#allocation3] sm:$0xff]  ;;  %258 = vrot.lane.b32.xlu2 %v1573_v10, %s1510_s21  ;;  %262 = vrot.lane.b32.xlu1 %v1590_v16, %s1510_s21  ;;  %243 = vst.msk [vmem:[#allocation3 + $0x18] sm:$0x3f] %vm240_vm4, %v1590_v16 }
  0x94   : > { %v466_v22 = vmul.f32 %v462_v19, %v1586_v14  ;;  %260 = vrot.lane.b32.xlu0 %v1592_v17, %s1510_s21  ;;  %242 = vst.msk [vmem:[#allocation3 + $0x10] sm:$0xff] %vm238_vm3, %v1592_v17  ;;  %v1607_v23 = vld [vmem:[#allocation2 + $0x30] sm:$0xff]  ;;  %v1609_v24 = vld [vmem:[#allocation2 + $0x38] sm:$0x3f] }
  0x95   : > { %v580_v25 = vld [vmem:[#allocation3 + $0x1] sm:$0xff]  ;;  %246 = vst.msk [vmem:[#allocation3 + $0x30] sm:$0xff] %vm238_vm3, %v1607_v23 }
  0x96   : > { %v699_v26 = vld [vmem:[#allocation3 + $0x2] sm:$0xff]  ;;  %v584_v29 = vmul.f32 %v580_v25, %v1586_v14  ;;  %247 = vst.msk [vmem:[#allocation3 + $0x38] sm:$0x3f] %vm240_vm4, %v1609_v24  ;;  %v470_v42 = vsel %vm238_vm3, %v466_v22, 0.0 }
  0x97   : > { %v818_v27 = vld [vmem:[#allocation3 + $0x3] sm:$0xff]  ;;  %v703_v30 = vmul.f32 %v699_v26, %v1586_v14 }
  0x98   : > { %v822_v31 = vmul.f32 %v818_v27, %v1586_v14  ;;  %v937_v32 = vld [vmem:[#allocation3 + $0x4] sm:$0xff]  ;;  %v588_v43 = vsel %vm238_vm3, %v584_v29, 0.0 }
  0x99   : > { %v1056_v33 = vld [vmem:[#allocation3 + $0x5] sm:$0xff]  ;;  %v941_v36 = vmul.f32 %v937_v32, %v1586_v14  ;;  %v707_v44 = vsel %vm238_vm3, %v703_v30, 0.0 }
  0x9a   : > { %v1175_v34 = vld [vmem:[#allocation3 + $0x6] sm:$0xff]  ;;  %v1060_v37 = vmul.f32 %v1056_v33, %v1586_v14  ;;  %v826_v49 = vsel %vm238_vm3, %v822_v31, 0.0 }
  0x9b   : > { %v1179_v38 = vmul.f32 %v1175_v34, %v1586_v14  ;;  %v464_v39 = vld [vmem:[#allocation3 + $0x20] sm:$0xff]  ;;  %v945_v50 = vsel %vm238_vm3, %v941_v36, 0.0  ;;  %v463_v58 = vld [vmem:[#allocation3 + $0x10] sm:$0xff]  ;;  %264 = vrot.lane.b32.xlu2 %v1577_v11, %s1510_s21  ;;  %268 = vrot.lane.b32.xlu1 %v1607_v23, %s1510_s21 }
  0x9c   : > { %v582_v40 = vld [vmem:[#allocation3 + $0x21] sm:$0xff]  ;;  %v468_v45 = vmul.f32 %v464_v39, %v1600_v21  ;;  %v1064_v51 = vsel %vm238_vm3, %v1060_v37, 0.0  ;;  %v581_v59 = vld [vmem:[#allocation3 + $0x11] sm:$0xff]  ;;  %v467_v1 = vmul.f32 %v463_v58, %v1613_v28  ;;  %266 = vrot.lane.b32.xlu0 %v1580_v13, %s1510_s21 }
  0x9d   : > { %v701_v41 = vld [vmem:[#allocation3 + $0x22] sm:$0xff]  ;;  %v586_v53 = vmul.f32 %v582_v40, %v1600_v21  ;;  %v1183_v54 = vsel %vm238_vm3, %v1179_v38, 0.0  ;;  %v700_v60 = vld [vmem:[#allocation3 + $0x12] sm:$0xff]  ;;  %v585_v2 = vmul.f32 %v581_v59, %v1613_v28 }
  0x9e   : > { %v820_v46 = vld [vmem:[#allocation3 + $0x23] sm:$0xff]  ;;  %v473_v55 = vsel %vm238_vm3, %v468_v45, 0.0  ;;  %v705_v56 = vmul.f32 %v701_v41, %v1600_v21  ;;  %v704_v3 = vmul.f32 %v700_v60, %v1613_v28  ;;  %v819_v4 = vld [vmem:[#allocation3 + $0x13] sm:$0xff]  ;;  %v471_v20 = vsel %vm238_vm3, %v467_v1, 0.0 }
  0x9f   : > { %v939_v47 = vld [vmem:[#allocation3 + $0x24] sm:$0xff]  ;;  %v824_v57 = vmul.f32 %v820_v46, %v1600_v21  ;;  %v591_v61 = vsel %vm238_vm3, %v586_v53, 0.0  ;;  %v938_v5 = vld [vmem:[#allocation3 + $0x14] sm:$0xff]  ;;  %v823_v9 = vmul.f32 %v819_v4, %v1613_v28  ;;  %v589_v22 = vsel %vm238_vm3, %v585_v2, 0.0 }
  0xa0   : > { %v1058_v48 = vld [vmem:[#allocation3 + $0x25] sm:$0xff]  ;;  %v943_v62 = vmul.f32 %v939_v47, %v1600_v21  ;;  %v1057_v6 = vld [vmem:[#allocation3 + $0x15] sm:$0xff]  ;;  %v710_v7 = vsel %vm238_vm3, %v705_v56, 0.0  ;;  %v942_v12 = vmul.f32 %v938_v5, %v1613_v28  ;;  %v708_v25 = vsel %vm238_vm3, %v704_v3, 0.0 }
  0xa1   : > { %v1177_v52 = vld [vmem:[#allocation3 + $0x26] sm:$0xff]  ;;  %v1062_v63 = vmul.f32 %v1058_v48, %v1600_v21  ;;  %v1061_v15 = vmul.f32 %v1057_v6, %v1613_v28  ;;  %v1176_v18 = vld [vmem:[#allocation3 + $0x16] sm:$0xff]  ;;  %v829_v19 = vsel %vm238_vm3, %v824_v57, 0.0  ;;  %v472_v27 = vadd.f32 %v471_v20, %v470_v42 }
  0xa2   : > { %v1181_v0 = vmul.f32 %v1177_v52, %v1600_v21  ;;  %v1180_v26 = vmul.f32 %v1176_v18, %v1613_v28  ;;  %v590_v29 = vadd.f32 %v589_v22, %v588_v43  ;;  %v709_v30 = vadd.f32 %v708_v25, %v707_v44  ;;  %v465_v32 = vld [vmem:[#allocation3 + $0x30] sm:$0xff] }
  0xa3   : > { %v827_v31 = vsel %vm238_vm3, %v823_v9, 0.0  ;;  %v946_v34 = vsel %vm238_vm3, %v942_v12, 0.0  ;;  %v1065_v36 = vsel %vm238_vm3, %v1061_v15, 0.0  ;;  %v583_v38 = vld [vmem:[#allocation3 + $0x31] sm:$0xff]  ;;  %v474_v45 = vadd.f32 %v473_v55, %v472_v27  ;;  %270 = vrot.lane.b32.xlu2 %v1609_v24, %s1510_s21  ;;  %291 = vrot.lane.b32.xlu1 %v1573_v10, %s1511_s23 }
  0xa4   : > { %v828_v33 = vadd.f32 %v827_v31, %v826_v49  ;;  %v1184_v37 = vsel %vm238_vm3, %v1180_v26, 0.0  ;;  %v947_v39 = vadd.f32 %v946_v34, %v945_v50  ;;  %v1066_v40 = vadd.f32 %v1065_v36, %v1064_v51  ;;  %v702_v47 = vld [vmem:[#allocation3 + $0x32] sm:$0xff]  ;;  %289 = vrot.lane.b32.xlu0 %v1568_v8, %s1511_s23 }
  0xa5   : > { %v1185_v41 = vadd.f32 %v1184_v37, %v1183_v54  ;;  %v469_v42 = vmul.f32 %v465_v32, %v1620_v35  ;;  %v592_v43 = vadd.f32 %v591_v61, %v590_v29  ;;  %v711_v44 = vadd.f32 %v710_v7, %v709_v30  ;;  %v821_v48 = vld [vmem:[#allocation3 + $0x33] sm:$0xff] }
  0xa6   : > { %v830_v46 = vadd.f32 %v829_v19, %v828_v33  ;;  %v948_v49 = vsel %vm238_vm3, %v943_v62, 0.0  ;;  %v1067_v52 = vsel %vm238_vm3, %v1062_v63, 0.0  ;;  %v1186_v53 = vsel %vm238_vm3, %v1181_v0, 0.0  ;;  %v940_v56 = vld [vmem:[#allocation3 + $0x34] sm:$0xff] }
  0xa7   : > { %v1059_v57 = vld [vmem:[#allocation3 + $0x35] sm:$0xff]  ;;  %v587_v50 = vmul.f32 %v583_v38, %v1620_v35  ;;  %v475_v51 = vsel %vm238_vm3, %v469_v42, 0.0  ;;  %v949_v54 = vadd.f32 %v948_v49, %v947_v39  ;;  %v1068_v55 = vadd.f32 %v1067_v52, %v1066_v40 }
  0xa8   : > { %v1178_v58 = vld [vmem:[#allocation3 + $0x36] sm:$0xff]  ;;  %v1187_v59 = vadd.f32 %v1186_v53, %v1185_v41  ;;  %v476_v60 = vadd.f32 %v475_v51, %v474_v45  ;;  %v706_v62 = vmul.f32 %v702_v47, %v1620_v35  ;;  %v825_v63 = vmul.f32 %v821_v48, %v1620_v35 }
  0xa9   : > { %v593_v61 = vsel %vm238_vm3, %v587_v50, 0.0  ;;  %v944_v1 = vmul.f32 %v940_v56, %v1620_v35  ;;  %v1063_v2 = vmul.f32 %v1059_v57, %v1620_v35  ;;  %v1182_v3 = vmul.f32 %v1178_v58, %v1620_v35 }
  0xaa   : > { %v594_v0 = vadd.f32 %v593_v61, %v592_v43  ;;  %477 = vst.msk [vmem:[%s1676_s26] sm:$0xff] %vm238_vm3, %v476_v60  ;;  %v712_v4 = vsel %vm238_vm3, %v706_v62, 0.0  ;;  %v831_v5 = vsel %vm238_vm3, %v825_v63, 0.0 }
  0xab   : > { %v713_v6 = vadd.f32 %v712_v4, %v711_v44  ;;  %v832_v7 = vadd.f32 %v831_v5, %v830_v46  ;;  %v950_v9 = vsel %vm238_vm3, %v944_v1, 0.0  ;;  %v1069_v12 = vsel %vm238_vm3, %v1063_v2, 0.0  ;;  %297 = vrot.lane.b32.xlu1 %v1577_v11, %s1511_s23  ;;  %293 = vrot.lane.b32.xlu2 %v1592_v17, %s1511_s23 }
  0xac   : > { %1405 = vst.msk [vmem:[%s1676_s26 + $0x38] sm:$0xff] %vm238_vm3, %v594_v0  ;;  %v951_v15 = vadd.f32 %v950_v9, %v949_v54  ;;  %v1070_v18 = vadd.f32 %v1069_v12, %v1068_v55  ;;  %v1188_v19 = vsel %vm238_vm3, %v1182_v3, 0.0  ;;  %295 = vrot.lane.b32.xlu0 %v1590_v16, %s1511_s23 }
  0xad   : > { %1412 = vst.msk [vmem:[%s1676_s26 + $0x70] sm:$0xff] %vm238_vm3, %v713_v6  ;;  %v1189_v20 = vadd.f32 %v1188_v19, %v1187_v59 }
  0xae   : > { %1419 = vst.msk [vmem:[%s1676_s26 + $0xa8] sm:$0xff] %vm238_vm3, %v832_v7 }
  0xaf   : > { %1426 = vst.msk [vmem:[%s1676_s26 + $0xe0] sm:$0xff] %vm238_vm3, %v951_v15 }
  0xb0   : > { %1433 = vst.msk [vmem:[%s1676_s26 + $0x118] sm:$0xff] %vm238_vm3, %v1070_v18 }
  0xb1   : > { %1440 = vst.msk [vmem:[%s1676_s26 + $0x150] sm:$0xff] %vm238_vm3, %v1189_v20 }
  0xb3   : > { %303 = vrot.lane.b32.xlu1 %v1609_v24, %s1511_s23  ;;  %299 = vrot.lane.b32.xlu2 %v1580_v13, %s1511_s23 }
  0xb4   : > { %301 = vrot.lane.b32.xlu0 %v1607_v23, %s1511_s23 }
  0xbb   : > { %326 = vrot.lane.b32.xlu1 %v1592_v17, %s1512_s27  ;;  %322 = vrot.lane.b32.xlu2 %v1568_v8, %s1512_s27 }
  0xbc   : > { %324 = vrot.lane.b32.xlu0 %v1573_v10, %s1512_s27 }
  0xc3   : > { %332 = vrot.lane.b32.xlu1 %v1580_v13, %s1512_s27  ;;  %328 = vrot.lane.b32.xlu2 %v1590_v16, %s1512_s27 }
  0xc4   : > { %330 = vrot.lane.b32.xlu0 %v1577_v11, %s1512_s27 }
  0xcb   : > { %355 = vrot.lane.b32.xlu1 %v1568_v8, %s1513_s28  ;;  %334 = vrot.lane.b32.xlu2 %v1607_v23, %s1512_s27 }
  0xcc   : > { %336 = vrot.lane.b32.xlu0 %v1609_v24, %s1512_s27 }
  0xd3   : > { %361 = vrot.lane.b32.xlu1 %v1590_v16, %s1513_s28  ;;  %357 = vrot.lane.b32.xlu2 %v1573_v10, %s1513_s28 }
  0xd4   : > { %359 = vrot.lane.b32.xlu0 %v1592_v17, %s1513_s28 }
  0xdb   : > { %388 = vrot.lane.b32.xlu1 %v1568_v8, %s1514_s29  ;;  %363 = vrot.lane.b32.xlu2 %v1577_v11, %s1513_s28 }
  0xdc   : > { %365 = vrot.lane.b32.xlu0 %v1580_v13, %s1513_s28 }
  0xe3   : > { %394 = vrot.lane.b32.xlu1 %v1590_v16, %s1514_s29  ;;  %390 = vrot.lane.b32.xlu2 %v1573_v10, %s1514_s29 }
  0xe4   : > { %392 = vrot.lane.b32.xlu0 %v1592_v17, %s1514_s29 }
  0xe5   : > { %v257_v22 = vpop.permute.xlu2 %256 }
  0xe6   : > { %281 = vst.msk [vmem:[#allocation3 + $0x40] sm:$0xff] %vm238_vm3, %v257_v22 }
  0xeb   : > { %425 = vrot.lane.b32.xlu1 %v1592_v17, %s1515_s30  ;;  %421 = vrot.lane.b32.xlu2 %v1568_v8, %s1515_s30 }
  0xec   : > { %423 = vrot.lane.b32.xlu0 %v1573_v10, %s1515_s30 }
  0xed   : > { %v259_v25 = vpop.permute.xlu2 %258 }
  0xee   : > { %282 = vst.msk [vmem:[#allocation3 + $0x48] sm:$0x3f] %vm240_vm4, %v259_v25 }
  0xf3   : > { %398 = vrot.lane.b32.xlu1 %v1580_v13, %s1514_s29  ;;  %427 = vrot.lane.b32.xlu2 %v1590_v16, %s1515_s30 }
  0xf4   : > { %396 = vrot.lane.b32.xlu0 %v1577_v11, %s1514_s29 }
  0xf5   : > { %v265_v26 = vpop.permute.xlu2 %264  ;;  %v716_v29 = vld [vmem:[#allocation3 + $0x42] sm:$0xff] }
  0xf6   : > { %285 = vst.msk [vmem:[#allocation3 + $0x60] sm:$0xff] %vm238_vm3, %v265_v26  ;;  %v835_v30 = vld [vmem:[#allocation3 + $0x43] sm:$0xff]  ;;  %v720_v38 = vmul.f32 %v716_v29, %v1586_v14 }
  0xf7   : > { %v954_v32 = vld [vmem:[#allocation3 + $0x44] sm:$0xff]  ;;  %v839_v39 = vmul.f32 %v835_v30, %v1586_v14 }
  0xf8   : > { %v1073_v33 = vld [vmem:[#allocation3 + $0x45] sm:$0xff]  ;;  %v958_v45 = vmul.f32 %v954_v32, %v1586_v14  ;;  %v724_v59 = vsel %vm238_vm3, %v720_v38, 0.0 }
  0xf9   : > { %v1192_v34 = vld [vmem:[#allocation3 + $0x46] sm:$0xff]  ;;  %v1077_v42 = vmul.f32 %v1073_v33, %v1586_v14  ;;  %v843_v60 = vsel %vm238_vm3, %v839_v39, 0.0 }
  0xfa   : > { %v1196_v43 = vmul.f32 %v1192_v34, %v1586_v14  ;;  %v962_v63 = vsel %vm238_vm3, %v958_v45, 0.0 }
  0xfb   : > { %367 = vrot.lane.b32.xlu1 %v1607_v23, %s1513_s28  ;;  %429 = vrot.lane.b32.xlu2 %v1577_v11, %s1515_s30  ;;  %v478_v11 = vld [vmem:[#allocation3 + $0x40] sm:$0xff]  ;;  %v1081_v0 = vsel %vm238_vm3, %v1077_v42, 0.0 }
  0xfc   : > { %431 = vrot.lane.b32.xlu0 %v1580_v13, %s1515_s30  ;;  %v597_v13 = vld [vmem:[#allocation3 + $0x41] sm:$0xff]  ;;  %v482_v27 = vmul.f32 %v478_v11, %v1586_v14  ;;  %v1200_v3 = vsel %vm238_vm3, %v1196_v43, 0.0 }
  0xfd   : > { %v271_v8 = vpop.permute.xlu2 %270  ;;  %v601_v31 = vmul.f32 %v597_v13, %v1586_v14  ;;  %v480_v40 = vld [vmem:[#allocation3 + $0x60] sm:$0xff] }
  0xfe   : > { %288 = vst.msk [vmem:[#allocation3 + $0x78] sm:$0x3f] %vm240_vm4, %v271_v8  ;;  %v484_v58 = vmul.f32 %v480_v40, %v1600_v21 }
  0xff   : > { %v605_v47 = vsel %vm238_vm3, %v601_v31, 0.0 }
 0x100   : > { %v489_v7 = vsel %vm238_vm3, %v484_v58, 0.0 }
 0x103   : > { %402 = vrot.lane.b32.xlu1 %v1609_v24, %s1514_s29  ;;  %369 = vrot.lane.b32.xlu2 %v1609_v24, %s1513_s28 }
 0x104   : > { %400 = vrot.lane.b32.xlu0 %v1607_v23, %s1514_s29 }
 0x105   : > { %v263_v10 = vpop.permute.xlu1 %262  ;;  %v294_v16 = vpop.permute.xlu2 %293 }
 0x106   : > { %284 = vst.msk [vmem:[#allocation3 + $0x58] sm:$0x3f] %vm240_vm4, %v263_v10  ;;  %v261_v17 = vpop.permute.xlu0 %260 }
 0x107   : > { %316 = vst.msk [vmem:[#allocation3 + $0x90] sm:$0xff] %vm238_vm3, %v294_v16 }
 0x108   : > { %283 = vst.msk [vmem:[#allocation3 + $0x50] sm:$0xff] %vm238_vm3, %v261_v17 }
 0x10b   : > { %433 = vrot.lane.b32.xlu2 %v1607_v23, %s1515_s30  ;;  %v486_v23 = vsel %vm238_vm3, %v482_v27, 0.0 }
 0x10c   : > { %435 = vrot.lane.b32.xlu0 %v1609_v24, %s1515_s30 }
 0x10d   : > { %v269_v36 = vpop.permute.xlu1 %268  ;;  %v300_v37 = vpop.permute.xlu2 %299 }
 0x10e   : > { %287 = vst.msk [vmem:[#allocation3 + $0x70] sm:$0xff] %vm238_vm3, %v269_v36  ;;  %v267_v41 = vpop.permute.xlu0 %266 }
 0x10f   : > { %v479_v44 = vld [vmem:[#allocation3 + $0x50] sm:$0xff]  ;;  %319 = vst.msk [vmem:[#allocation3 + $0xa8] sm:$0x3f] %vm240_vm4, %v300_v37 }
 0x110   : > { %v598_v24 = vld [vmem:[#allocation3 + $0x51] sm:$0xff]  ;;  %v483_v48 = vmul.f32 %v479_v44, %v1613_v28  ;;  %286 = vst.msk [vmem:[#allocation3 + $0x68] sm:$0x3f] %vm240_vm4, %v267_v41 }
 0x111   : > { %v717_v46 = vld [vmem:[#allocation3 + $0x52] sm:$0xff]  ;;  %v602_v49 = vmul.f32 %v598_v24, %v1613_v28 }
 0x112   : > { %v721_v52 = vmul.f32 %v717_v46, %v1613_v28  ;;  %v836_v53 = vld [vmem:[#allocation3 + $0x53] sm:$0xff]  ;;  %v487_v61 = vsel %vm238_vm3, %v483_v48, 0.0 }
 0x113   : > { %v955_v56 = vld [vmem:[#allocation3 + $0x54] sm:$0xff]  ;;  %v840_v50 = vmul.f32 %v836_v53, %v1613_v28  ;;  %v488_v1 = vadd.f32 %v487_v61, %v486_v23  ;;  %v606_v2 = vsel %vm238_vm3, %v602_v49, 0.0 }
 0x114   : > { %v1074_v57 = vld [vmem:[#allocation3 + $0x55] sm:$0xff]  ;;  %v959_v51 = vmul.f32 %v955_v56, %v1613_v28  ;;  %v725_v4 = vsel %vm238_vm3, %v721_v52, 0.0  ;;  %v607_v25 = vadd.f32 %v606_v2, %v605_v47 }
 0x115   : > { %v1078_v54 = vmul.f32 %v1074_v57, %v1613_v28  ;;  %v1193_v55 = vld [vmem:[#allocation3 + $0x56] sm:$0xff]  ;;  %v844_v5 = vsel %vm238_vm3, %v840_v50, 0.0  ;;  %v292_v20 = vpop.permute.xlu1 %291  ;;  %v323_v22 = vpop.permute.xlu2 %322  ;;  %v726_v27 = vadd.f32 %v725_v4, %v724_v59  ;;  %v490_v31 = vadd.f32 %v489_v7, %v488_v1 }
 0x116   : > { %v1197_v62 = vmul.f32 %v1193_v55, %v1613_v28  ;;  %v963_v6 = vsel %vm238_vm3, %v959_v51, 0.0  ;;  %v481_v15 = vld [vmem:[#allocation3 + $0x70] sm:$0xff]  ;;  %315 = vst.msk [vmem:[#allocation3 + $0x88] sm:$0x3f] %vm240_vm4, %v292_v20  ;;  %v290_v13 = vpop.permute.xlu0 %289  ;;  %v845_v29 = vadd.f32 %v844_v5, %v843_v60 }
 0x117   : > { %v1082_v9 = vsel %vm238_vm3, %v1078_v54, 0.0  ;;  %v600_v18 = vld [vmem:[#allocation3 + $0x71] sm:$0xff]  ;;  %v485_v26 = vmul.f32 %v481_v15, %v1620_v35  ;;  %v964_v30 = vadd.f32 %v963_v6, %v962_v63  ;;  %v599_v33 = vld [vmem:[#allocation3 + $0x61] sm:$0xff]  ;;  %347 = vst.msk [vmem:[#allocation3 + $0xc0] sm:$0xff] %vm238_vm3, %v323_v22 }
 0x118   : > { %v1201_v12 = vsel %vm238_vm3, %v1197_v62, 0.0  ;;  %v719_v19 = vld [vmem:[#allocation3 + $0x72] sm:$0xff]  ;;  %v604_v8 = vmul.f32 %v600_v18, %v1620_v35  ;;  %v718_v34 = vld [vmem:[#allocation3 + $0x62] sm:$0xff]  ;;  %v1083_v36 = vadd.f32 %v1082_v9, %v1081_v0  ;;  %314 = vst.msk [vmem:[#allocation3 + $0x80] sm:$0xff] %vm238_vm3, %v290_v13  ;;  %v603_v47 = vmul.f32 %v599_v33, %v1600_v21 }
 0x119   : > { %v723_v10 = vmul.f32 %v719_v19, %v1620_v35  ;;  %v838_v16 = vld [vmem:[#allocation3 + $0x73] sm:$0xff]  ;;  %v1202_v37 = vadd.f32 %v1201_v12, %v1200_v3  ;;  %v491_v38 = vsel %vm238_vm3, %v485_v26, 0.0  ;;  %v837_v40 = vld [vmem:[#allocation3 + $0x63] sm:$0xff]  ;;  %v722_v48 = vmul.f32 %v718_v34, %v1600_v21 }
 0x11a   : > { %v957_v17 = vld [vmem:[#allocation3 + $0x74] sm:$0xff]  ;;  %v842_v39 = vmul.f32 %v838_v16, %v1620_v35  ;;  %v956_v41 = vld [vmem:[#allocation3 + $0x64] sm:$0xff]  ;;  %v492_v45 = vadd.f32 %v491_v38, %v490_v31  ;;  %v610_v42 = vsel %vm238_vm3, %v604_v8, 0.0  ;;  %v841_v49 = vmul.f32 %v837_v40, %v1600_v21 }
 0x11b   : > { %v1076_v11 = vld [vmem:[#allocation3 + $0x75] sm:$0xff]  ;;  %v1075_v23 = vld [vmem:[#allocation3 + $0x65] sm:$0xff]  ;;  %v961_v43 = vmul.f32 %v957_v17, %v1620_v35  ;;  %v729_v46 = vsel %vm238_vm3, %v723_v10, 0.0  ;;  %v960_v53 = vmul.f32 %v956_v41, %v1600_v21  ;;  %v608_v50 = vsel %vm238_vm3, %v603_v47, 0.0 }
 0x11c   : > { %v1195_v32 = vld [vmem:[#allocation3 + $0x76] sm:$0xff]  ;;  %v1080_v44 = vmul.f32 %v1076_v11, %v1620_v35  ;;  %v1194_v24 = vld [vmem:[#allocation3 + $0x66] sm:$0xff]  ;;  %1399 = vst.msk [vmem:[%s1676_s26 + $0x8] sm:$0xff] %vm238_vm3, %v492_v45  ;;  %v1079_v56 = vmul.f32 %v1075_v23, %v1600_v21  ;;  %v848_v58 = vsel %vm238_vm3, %v842_v39, 0.0  ;;  %v727_v51 = vsel %vm238_vm3, %v722_v48, 0.0 }
 0x11d   : > { %v1199_v52 = vmul.f32 %v1195_v32, %v1620_v35  ;;  %v1198_v57 = vmul.f32 %v1194_v24, %v1600_v21  ;;  %v846_v54 = vsel %vm238_vm3, %v841_v49, 0.0  ;;  %v609_v55 = vadd.f32 %v608_v50, %v607_v25  ;;  %v298_v62 = vpop.permute.xlu1 %297  ;;  %v329_v63 = vpop.permute.xlu2 %328  ;;  %v496_v5 = vld [vmem:[#allocation3 + $0x90] sm:$0xff] }
 0x11e   : > { %v728_v59 = vadd.f32 %v727_v51, %v726_v27  ;;  %v847_v60 = vadd.f32 %v846_v54, %v845_v29  ;;  %v965_v61 = vsel %vm238_vm3, %v960_v53, 0.0  ;;  %v967_v0 = vsel %vm238_vm3, %v961_v43, 0.0  ;;  %318 = vst.msk [vmem:[#allocation3 + $0xa0] sm:$0xff] %vm238_vm3, %v298_v62  ;;  %v296_v4 = vpop.permute.xlu0 %295 }
 0x11f   : > { %v966_v1 = vadd.f32 %v965_v61, %v964_v30  ;;  %v1084_v2 = vsel %vm238_vm3, %v1079_v56, 0.0  ;;  %v1203_v3 = vsel %vm238_vm3, %v1198_v57, 0.0  ;;  %v611_v6 = vadd.f32 %v610_v42, %v609_v55  ;;  %350 = vst.msk [vmem:[#allocation3 + $0xd8] sm:$0x3f] %vm240_vm4, %v329_v63  ;;  %v495_v20 = vld [vmem:[#allocation3 + $0x80] sm:$0xff] }
 0x120   : > { %v730_v7 = vadd.f32 %v729_v46, %v728_v59  ;;  %v849_v9 = vadd.f32 %v848_v58, %v847_v60  ;;  %v1085_v12 = vadd.f32 %v1084_v2, %v1083_v36  ;;  %v1086_v15 = vsel %vm238_vm3, %v1080_v44, 0.0  ;;  %v614_v22 = vld [vmem:[#allocation3 + $0x81] sm:$0xff]  ;;  %317 = vst.msk [vmem:[#allocation3 + $0x98] sm:$0x3f] %vm240_vm4, %v296_v4 }
 0x121   : > { %v968_v18 = vadd.f32 %v967_v0, %v966_v1  ;;  %v1204_v19 = vadd.f32 %v1203_v3, %v1202_v37  ;;  %v733_v25 = vld [vmem:[#allocation3 + $0x82] sm:$0xff]  ;;  %v1205_v26 = vsel %vm238_vm3, %v1199_v52, 0.0  ;;  %1406 = vst.msk [vmem:[%s1676_s26 + $0x40] sm:$0xff] %vm238_vm3, %v611_v6  ;;  %v499_v10 = vmul.f32 %v495_v20, %v1586_v14 }
 0x122   : > { %v1087_v8 = vadd.f32 %v1086_v15, %v1085_v12  ;;  %v852_v16 = vld [vmem:[#allocation3 + $0x83] sm:$0xff]  ;;  %v500_v13 = vmul.f32 %v496_v5, %v1613_v28  ;;  %1413 = vst.msk [vmem:[%s1676_s26 + $0x78] sm:$0xff] %vm238_vm3, %v730_v7  ;;  %v618_v29 = vmul.f32 %v614_v22, %v1586_v14  ;;  %v737_v30 = vmul.f32 %v733_v25, %v1586_v14 }
 0x123   : > { %v971_v17 = vld [vmem:[#allocation3 + $0x84] sm:$0xff]  ;;  %v1206_v27 = vadd.f32 %v1205_v26, %v1204_v19  ;;  %1420 = vst.msk [vmem:[%s1676_s26 + $0xb0] sm:$0xff] %vm238_vm3, %v849_v9  ;;  %v503_v31 = vsel %vm238_vm3, %v499_v10, 0.0  ;;  %v856_v32 = vmul.f32 %v852_v16, %v1586_v14 }
 0x124   : > { %v1090_v11 = vld [vmem:[#allocation3 + $0x85] sm:$0xff]  ;;  %1427 = vst.msk [vmem:[%s1676_s26 + $0xe8] sm:$0xff] %vm238_vm3, %v968_v18  ;;  %v975_v33 = vmul.f32 %v971_v17, %v1586_v14  ;;  %v504_v41 = vsel %vm238_vm3, %v500_v13, 0.0  ;;  %v622_v23 = vsel %vm238_vm3, %v618_v29, 0.0  ;;  %v741_v46 = vsel %vm238_vm3, %v737_v30, 0.0 }
 0x125   : > { %v1094_v34 = vmul.f32 %v1090_v11, %v1586_v14  ;;  %1434 = vst.msk [vmem:[%s1676_s26 + $0x120] sm:$0xff] %vm238_vm3, %v1087_v8  ;;  %v1209_v36 = vld [vmem:[#allocation3 + $0x86] sm:$0xff]  ;;  %v304_v39 = vpop.permute.xlu1 %303  ;;  %v335_v40 = vpop.permute.xlu2 %334  ;;  %v505_v24 = vadd.f32 %v504_v41, %v503_v31  ;;  %v860_v53 = vsel %vm238_vm3, %v856_v32, 0.0 }
 0x126   : > { %v497_v37 = vld [vmem:[#allocation3 + $0xa0] sm:$0xff]  ;;  %1441 = vst.msk [vmem:[%s1676_s26 + $0x158] sm:$0xff] %vm238_vm3, %v1206_v27  ;;  %v302_v44 = vpop.permute.xlu0 %301  ;;  %v979_v56 = vsel %vm238_vm3, %v975_v33, 0.0  ;;  %v1213_v58 = vmul.f32 %v1209_v36, %v1586_v14 }
 0x127   : > { %v616_v38 = vld [vmem:[#allocation3 + $0xa1] sm:$0xff]  ;;  %v501_v47 = vmul.f32 %v497_v37, %v1600_v21  ;;  %v615_v49 = vld [vmem:[#allocation3 + $0x91] sm:$0xff]  ;;  %321 = vst.msk [vmem:[#allocation3 + $0xb8] sm:$0x3f] %vm240_vm4, %v304_v39  ;;  %v1098_v57 = vsel %vm238_vm3, %v1094_v34, 0.0 }
 0x128   : > { %v735_v45 = vld [vmem:[#allocation3 + $0xa2] sm:$0xff]  ;;  %v734_v52 = vld [vmem:[#allocation3 + $0x92] sm:$0xff]  ;;  %v620_v55 = vmul.f32 %v616_v38, %v1600_v21  ;;  %353 = vst.msk [vmem:[#allocation3 + $0xf0] sm:$0xff] %vm238_vm3, %v335_v40  ;;  %v619_v1 = vmul.f32 %v615_v49, %v1613_v28  ;;  %v1217_v10 = vsel %vm238_vm3, %v1213_v58, 0.0 }
 0x129   : > { %v854_v42 = vld [vmem:[#allocation3 + $0xa3] sm:$0xff]  ;;  %v853_v50 = vld [vmem:[#allocation3 + $0x93] sm:$0xff]  ;;  %v739_v59 = vmul.f32 %v735_v45, %v1600_v21  ;;  %v738_v2 = vmul.f32 %v734_v52, %v1613_v28  ;;  %320 = vst.msk [vmem:[#allocation3 + $0xb0] sm:$0xff] %vm238_vm3, %v302_v44  ;;  %v506_v4 = vsel %vm238_vm3, %v501_v47, 0.0 }
 0x12a   : > { %v973_v43 = vld [vmem:[#allocation3 + $0xa4] sm:$0xff]  ;;  %v972_v51 = vld [vmem:[#allocation3 + $0x94] sm:$0xff]  ;;  %v858_v60 = vmul.f32 %v854_v42, %v1600_v21  ;;  %v857_v3 = vmul.f32 %v853_v50, %v1613_v28  ;;  %v623_v12 = vsel %vm238_vm3, %v619_v1, 0.0  ;;  %v507_v27 = vadd.f32 %v506_v4, %v505_v24 }
 0x12b   : > { %v1092_v48 = vld [vmem:[#allocation3 + $0xa5] sm:$0xff]  ;;  %v1091_v54 = vld [vmem:[#allocation3 + $0x95] sm:$0xff]  ;;  %v977_v61 = vmul.f32 %v973_v43, %v1600_v21  ;;  %v976_v5 = vmul.f32 %v972_v51, %v1613_v28  ;;  %v742_v15 = vsel %vm238_vm3, %v738_v2, 0.0  ;;  %v624_v19 = vadd.f32 %v623_v12, %v622_v23 }
 0x12c   : > { %v1211_v62 = vld [vmem:[#allocation3 + $0xa6] sm:$0xff]  ;;  %v1210_v63 = vld [vmem:[#allocation3 + $0x96] sm:$0xff]  ;;  %v1096_v0 = vmul.f32 %v1092_v48, %v1600_v21  ;;  %v1095_v6 = vmul.f32 %v1091_v54, %v1613_v28  ;;  %v861_v18 = vsel %vm238_vm3, %v857_v3, 0.0  ;;  %v743_v20 = vadd.f32 %v742_v15, %v741_v46 }
 0x12d   : > { %v1214_v7 = vmul.f32 %v1210_v63, %v1613_v28  ;;  %v1215_v9 = vmul.f32 %v1211_v62, %v1600_v21  ;;  %v862_v22 = vadd.f32 %v861_v18, %v860_v53  ;;  %v980_v25 = vsel %vm238_vm3, %v976_v5, 0.0  ;;  %v327_v26 = vpop.permute.xlu1 %326  ;;  %v358_v8 = vpop.permute.xlu2 %357  ;;  %v512_v15 = vld [vmem:[#allocation3 + $0xc0] sm:$0xff] }
 0x12e   : > { %v981_v16 = vadd.f32 %v980_v25, %v979_v56  ;;  %v1099_v17 = vsel %vm238_vm3, %v1095_v6, 0.0  ;;  %349 = vst.msk [vmem:[#allocation3 + $0xd0] sm:$0xff] %vm238_vm3, %v327_v26  ;;  %v325_v13 = vpop.permute.xlu0 %324  ;;  %v625_v29 = vsel %vm238_vm3, %v620_v55, 0.0  ;;  %v744_v30 = vsel %vm238_vm3, %v739_v59, 0.0 }
 0x12f   : > { %v1218_v11 = vsel %vm238_vm3, %v1214_v7, 0.0  ;;  %v1100_v31 = vadd.f32 %v1099_v17, %v1098_v57  ;;  %381 = vst.msk [vmem:[#allocation3 + $0x108] sm:$0x3f] %vm240_vm4, %v358_v8  ;;  %v863_v32 = vsel %vm238_vm3, %v858_v60, 0.0  ;;  %v982_v33 = vsel %vm238_vm3, %v977_v61, 0.0  ;;  %v515_v25 = vld [vmem:[#allocation3 + $0xf0] sm:$0xff] }
 0x130   : > { %v1101_v34 = vsel %vm238_vm3, %v1096_v0, 0.0  ;;  %v1220_v36 = vsel %vm238_vm3, %v1215_v9, 0.0  ;;  %348 = vst.msk [vmem:[#allocation3 + $0xc8] sm:$0x3f] %vm240_vm4, %v325_v13  ;;  %v1219_v37 = vadd.f32 %v1218_v11, %v1217_v10  ;;  %v498_v38 = vld [vmem:[#allocation3 + $0xb0] sm:$0xff]  ;;  %v626_v40 = vadd.f32 %v625_v29, %v624_v19 }
 0x131   : > { %v617_v39 = vld [vmem:[#allocation3 + $0xb1] sm:$0xff]  ;;  %v745_v23 = vadd.f32 %v744_v30, %v743_v20  ;;  %v864_v45 = vadd.f32 %v863_v32, %v862_v22  ;;  %v502_v42 = vmul.f32 %v498_v38, %v1620_v35  ;;  %v983_v47 = vadd.f32 %v982_v33, %v981_v16 }
 0x132   : > { %v736_v41 = vld [vmem:[#allocation3 + $0xb2] sm:$0xff]  ;;  %v621_v43 = vmul.f32 %v617_v39, %v1620_v35  ;;  %v1102_v56 = vadd.f32 %v1101_v34, %v1100_v31  ;;  %v1221_v6 = vadd.f32 %v1220_v36, %v1219_v37  ;;  %v519_v33 = vmul.f32 %v515_v25, %v1620_v35 }
 0x133   : > { %v740_v44 = vmul.f32 %v736_v41, %v1620_v35  ;;  %v855_v24 = vld [vmem:[#allocation3 + $0xb3] sm:$0xff]  ;;  %v508_v58 = vsel %vm238_vm3, %v502_v42, 0.0 }
 0x134   : > { %v974_v46 = vld [vmem:[#allocation3 + $0xb4] sm:$0xff]  ;;  %v859_v49 = vmul.f32 %v855_v24, %v1620_v35  ;;  %v627_v50 = vsel %vm238_vm3, %v621_v43, 0.0  ;;  %v509_v55 = vadd.f32 %v508_v58, %v507_v27  ;;  %v516_v27 = vmul.f32 %v512_v15, %v1586_v14 }
 0x135   : > { %v1093_v48 = vld [vmem:[#allocation3 + $0xb5] sm:$0xff]  ;;  %v978_v52 = vmul.f32 %v974_v46, %v1620_v35  ;;  %v746_v51 = vsel %vm238_vm3, %v740_v44, 0.0  ;;  %v628_v59 = vadd.f32 %v627_v50, %v626_v40  ;;  %v333_v62 = vpop.permute.xlu1 %332  ;;  %v364_v63 = vpop.permute.xlu2 %363 }
 0x136   : > { %v1097_v53 = vmul.f32 %v1093_v48, %v1620_v35  ;;  %v1212_v57 = vld [vmem:[#allocation3 + $0xb6] sm:$0xff]  ;;  %v747_v60 = vadd.f32 %v746_v51, %v745_v23  ;;  %v865_v61 = vsel %vm238_vm3, %v859_v49, 0.0  ;;  %v331_v4 = vpop.permute.xlu0 %330  ;;  %1400 = vst.msk [vmem:[%s1676_s26 + $0x10] sm:$0xff] %vm238_vm3, %v509_v55  ;;  %v520_v43 = vsel %vm238_vm3, %v516_v27, 0.0 }
 0x137   : > { %v1216_v54 = vmul.f32 %v1212_v57, %v1620_v35  ;;  %v866_v0 = vadd.f32 %v865_v61, %v864_v45  ;;  %v984_v1 = vsel %vm238_vm3, %v978_v52, 0.0  ;;  %1407 = vst.msk [vmem:[%s1676_s26 + $0x48] sm:$0xff] %vm238_vm3, %v628_v59  ;;  %v513_v12 = vld [vmem:[#allocation3 + $0xd0] sm:$0xff]  ;;  %v631_v19 = vld [vmem:[#allocation3 + $0xc1] sm:$0xff]  ;;  %v525_v48 = vsel %vm238_vm3, %v519_v33, 0.0 }
 0x138   : > { %v1103_v2 = vsel %vm238_vm3, %v1097_v53, 0.0  ;;  %v985_v5 = vadd.f32 %v984_v1, %v983_v47  ;;  %1414 = vst.msk [vmem:[%s1676_s26 + $0x80] sm:$0xff] %vm238_vm3, %v747_v60  ;;  %v632_v18 = vld [vmem:[#allocation3 + $0xd1] sm:$0xff]  ;;  %v517_v26 = vmul.f32 %v513_v12, %v1613_v28  ;;  %v750_v13 = vld [vmem:[#allocation3 + $0xc2] sm:$0xff]  ;;  %v635_v31 = vmul.f32 %v631_v19, %v1586_v14 }
 0x139   : > { %v1222_v3 = vsel %vm238_vm3, %v1216_v54, 0.0  ;;  %v1104_v7 = vadd.f32 %v1103_v2, %v1102_v56  ;;  %1421 = vst.msk [vmem:[%s1676_s26 + $0xb8] sm:$0xff] %vm238_vm3, %v866_v0  ;;  %v751_v8 = vld [vmem:[#allocation3 + $0xd2] sm:$0xff]  ;;  %v636_v29 = vmul.f32 %v632_v18, %v1613_v28  ;;  %v869_v32 = vld [vmem:[#allocation3 + $0xc3] sm:$0xff]  ;;  %v754_v41 = vmul.f32 %v750_v13, %v1586_v14 }
 0x13a   : > { %v1223_v9 = vadd.f32 %v1222_v3, %v1221_v6  ;;  %1428 = vst.msk [vmem:[%s1676_s26 + $0xf0] sm:$0xff] %vm238_vm3, %v985_v5  ;;  %v870_v10 = vld [vmem:[#allocation3 + $0xd3] sm:$0xff]  ;;  %v755_v34 = vmul.f32 %v751_v8, %v1613_v28  ;;  %v988_v37 = vld [vmem:[#allocation3 + $0xc4] sm:$0xff]  ;;  %v521_v38 = vsel %vm238_vm3, %v517_v26, 0.0  ;;  %v873_v45 = vmul.f32 %v869_v32, %v1586_v14 }
 0x13b   : > { %1435 = vst.msk [vmem:[%s1676_s26 + $0x128] sm:$0xff] %vm238_vm3, %v1104_v7  ;;  %v989_v17 = vld [vmem:[#allocation3 + $0xd4] sm:$0xff]  ;;  %v874_v36 = vmul.f32 %v870_v10, %v1613_v28  ;;  %v1107_v42 = vld [vmem:[#allocation3 + $0xc5] sm:$0xff]  ;;  %v640_v44 = vsel %vm238_vm3, %v636_v29, 0.0  ;;  %v639_v24 = vsel %vm238_vm3, %v635_v31, 0.0  ;;  %v992_v46 = vmul.f32 %v988_v37, %v1586_v14 }
 0x13c   : > { %1442 = vst.msk [vmem:[%s1676_s26 + $0x160] sm:$0xff] %vm238_vm3, %v1223_v9  ;;  %v1108_v11 = vld [vmem:[#allocation3 + $0xd5] sm:$0xff]  ;;  %v993_v39 = vmul.f32 %v989_v17, %v1613_v28  ;;  %v1226_v47 = vld [vmem:[#allocation3 + $0xc6] sm:$0xff]  ;;  %v522_v49 = vadd.f32 %v521_v38, %v520_v43  ;;  %v759_v52 = vsel %vm238_vm3, %v755_v34, 0.0  ;;  %v758_v51 = vsel %vm238_vm3, %v754_v41, 0.0 }
 0x13d   : > { %v356_v20 = vpop.permute.xlu1 %355  ;;  %v391_v22 = vpop.permute.xlu2 %390  ;;  %352 = vst.msk [vmem:[#allocation3 + $0xe8] sm:$0x3f] %vm240_vm4, %v333_v62  ;;  %v1227_v30 = vld [vmem:[#allocation3 + $0xd6] sm:$0xff]  ;;  %v1112_v40 = vmul.f32 %v1108_v11, %v1613_v28  ;;  %v878_v53 = vsel %vm238_vm3, %v874_v36, 0.0  ;;  %v1111_v54 = vmul.f32 %v1107_v42, %v1586_v14  ;;  %v641_v61 = vadd.f32 %v640_v44, %v639_v24 }
 0x13e   : > { %v337_v16 = vpop.permute.xlu0 %336  ;;  %384 = vst.msk [vmem:[#allocation3 + $0x120] sm:$0xff] %vm238_vm3, %v364_v63  ;;  %v1231_v23 = vmul.f32 %v1227_v30, %v1613_v28  ;;  %v997_v58 = vsel %vm238_vm3, %v993_v39, 0.0  ;;  %v877_v62 = vsel %vm238_vm3, %v873_v45, 0.0  ;;  %v1230_v63 = vmul.f32 %v1226_v47, %v1586_v14 }
 0x13f   : > { %351 = vst.msk [vmem:[#allocation3 + $0xe0] sm:$0xff] %vm238_vm3, %v331_v4  ;;  %v1116_v50 = vsel %vm238_vm3, %v1112_v40, 0.0  ;;  %v996_v3 = vsel %vm238_vm3, %v992_v46, 0.0  ;;  %v760_v15 = vadd.f32 %v759_v52, %v758_v51  ;;  %v1115_v25 = vsel %vm238_vm3, %v1111_v54, 0.0 }
 0x140   : > { %380 = vst.msk [vmem:[#allocation3 + $0x100] sm:$0xff] %vm238_vm3, %v356_v20  ;;  %v1235_v60 = vsel %vm238_vm3, %v1231_v23, 0.0  ;;  %v879_v27 = vadd.f32 %v878_v53, %v877_v62  ;;  %v998_v34 = vadd.f32 %v997_v58, %v996_v3  ;;  %v1117_v36 = vadd.f32 %v1116_v50, %v1115_v25 }
 0x141   : > { %414 = vst.msk [vmem:[#allocation3 + $0x148] sm:$0x3f] %vm240_vm4, %v391_v22 }
 0x142   : > { %354 = vst.msk [vmem:[#allocation3 + $0xf8] sm:$0x3f] %vm240_vm4, %v337_v16  ;;  %v1234_v16 = vsel %vm238_vm3, %v1230_v63, 0.0 }
 0x143   : > { %v1236_v42 = vadd.f32 %v1235_v60, %v1234_v16 }
 0x145   : > { %v362_v56 = vpop.permute.xlu1 %361  ;;  %v422_v57 = vpop.permute.xlu2 %421  ;;  %v531_v55 = vld [vmem:[#allocation3 + $0x120] sm:$0xff] }
 0x146   : > { %383 = vst.msk [vmem:[#allocation3 + $0x118] sm:$0x3f] %vm240_vm4, %v362_v56  ;;  %v360_v59 = vpop.permute.xlu0 %359  ;;  %v514_v0 = vld [vmem:[#allocation3 + $0xe0] sm:$0xff]  ;;  %v535_v26 = vmul.f32 %v531_v55, %v1600_v21 }
 0x147   : > { %v633_v1 = vld [vmem:[#allocation3 + $0xe1] sm:$0xff]  ;;  %446 = vst.msk [vmem:[#allocation3 + $0x180] sm:$0xff] %vm238_vm3, %v422_v57  ;;  %v518_v4 = vmul.f32 %v514_v0, %v1600_v21 }
 0x148   : > { %v752_v2 = vld [vmem:[#allocation3 + $0xe2] sm:$0xff]  ;;  %v637_v5 = vmul.f32 %v633_v1, %v1600_v21  ;;  %382 = vst.msk [vmem:[#allocation3 + $0x110] sm:$0xff] %vm238_vm3, %v360_v59  ;;  %v1983_v43 = vsel %vm238_vm3, %v535_v26, 0.0 }
 0x149   : > { %v756_v6 = vmul.f32 %v752_v2, %v1600_v21  ;;  %v871_v7 = vld [vmem:[#allocation3 + $0xe3] sm:$0xff]  ;;  %v523_v8 = vsel %vm238_vm3, %v518_v4, 0.0  ;;  %v634_v33 = vld [vmem:[#allocation3 + $0xf1] sm:$0xff] }
 0x14a   : > { %v990_v9 = vld [vmem:[#allocation3 + $0xe4] sm:$0xff]  ;;  %v875_v18 = vmul.f32 %v871_v7, %v1600_v21  ;;  %v524_v17 = vadd.f32 %v523_v8, %v522_v49  ;;  %v642_v11 = vsel %vm238_vm3, %v637_v5, 0.0  ;;  %v638_v57 = vmul.f32 %v634_v33, %v1620_v35  ;;  %v753_v58 = vld [vmem:[#allocation3 + $0xf2] sm:$0xff] }
 0x14b   : > { %v1109_v12 = vld [vmem:[#allocation3 + $0xe5] sm:$0xff]  ;;  %v994_v19 = vmul.f32 %v990_v9, %v1600_v21  ;;  %v761_v13 = vsel %vm238_vm3, %v756_v6, 0.0  ;;  %v643_v44 = vadd.f32 %v642_v11, %v641_v61  ;;  %v872_v50 = vld [vmem:[#allocation3 + $0xf3] sm:$0xff]  ;;  %v757_v6 = vmul.f32 %v753_v58, %v1620_v35 }
 0x14c   : > { %v1113_v20 = vmul.f32 %v1109_v12, %v1600_v21  ;;  %v1228_v22 = vld [vmem:[#allocation3 + $0xe6] sm:$0xff]  ;;  %v880_v29 = vsel %vm238_vm3, %v875_v18, 0.0  ;;  %v526_v37 = vadd.f32 %v525_v48, %v524_v17  ;;  %v762_v24 = vadd.f32 %v761_v13, %v760_v15  ;;  %v991_v51 = vld [vmem:[#allocation3 + $0xf4] sm:$0xff] }
 0x14d   : > { %v1232_v10 = vmul.f32 %v1228_v22, %v1600_v21  ;;  %v999_v30 = vsel %vm238_vm3, %v994_v19, 0.0  ;;  %v529_v32 = vld [vmem:[#allocation3 + $0x100] sm:$0xff]  ;;  %v389_v23 = vpop.permute.xlu1 %388  ;;  %v428_v45 = vpop.permute.xlu2 %427  ;;  %v881_v52 = vadd.f32 %v880_v29, %v879_v27  ;;  %v1110_v61 = vld [vmem:[#allocation3 + $0xf5] sm:$0xff]  ;;  %v644_v3 = vsel %vm238_vm3, %v638_v57, 0.0 }
 0x14e   : > { %v1118_v31 = vsel %vm238_vm3, %v1113_v20, 0.0  ;;  %v648_v39 = vld [vmem:[#allocation3 + $0x101] sm:$0xff]  ;;  %413 = vst.msk [vmem:[#allocation3 + $0x140] sm:$0xff] %vm238_vm3, %v389_v23  ;;  %v366_v48 = vpop.permute.xlu0 %365  ;;  %v1000_v53 = vadd.f32 %v999_v30, %v998_v34  ;;  %v533_v55 = vmul.f32 %v529_v32, %v1586_v14  ;;  %v1229_v62 = vld [vmem:[#allocation3 + $0xf6] sm:$0xff]  ;;  %v645_v5 = vadd.f32 %v644_v3, %v643_v44 }
 0x14f   : > { %v1237_v38 = vsel %vm238_vm3, %v1232_v10, 0.0  ;;  %v767_v40 = vld [vmem:[#allocation3 + $0x102] sm:$0xff]  ;;  %1401 = vst.msk [vmem:[%s1676_s26 + $0x18] sm:$0xff] %vm238_vm3, %v526_v37  ;;  %v1119_v56 = vadd.f32 %v1118_v31, %v1117_v36  ;;  %v652_v59 = vmul.f32 %v648_v39, %v1586_v14  ;;  %v530_v63 = vld [vmem:[#allocation3 + $0x110] sm:$0xff]  ;;  %v876_v7 = vmul.f32 %v872_v50, %v1620_v35 }
 0x150   : > { %v886_v41 = vld [vmem:[#allocation3 + $0x103] sm:$0xff]  ;;  %v1238_v54 = vadd.f32 %v1237_v38, %v1236_v42  ;;  %v771_v60 = vmul.f32 %v767_v40, %v1586_v14  ;;  %v649_v4 = vld [vmem:[#allocation3 + $0x111] sm:$0xff]  ;;  %v995_v9 = vmul.f32 %v991_v51, %v1620_v35  ;;  %449 = vst.msk [vmem:[#allocation3 + $0x198] sm:$0x3f] %vm240_vm4, %v428_v45  ;;  %v1114_v15 = vmul.f32 %v1110_v61, %v1620_v35 }
 0x151   : > { %v1005_v46 = vld [vmem:[#allocation3 + $0x104] sm:$0xff]  ;;  %v890_v0 = vmul.f32 %v886_v41, %v1586_v14  ;;  %v1233_v18 = vmul.f32 %v1229_v62, %v1620_v35  ;;  %v534_v19 = vmul.f32 %v530_v63, %v1613_v28  ;;  %385 = vst.msk [vmem:[#allocation3 + $0x128] sm:$0x3f] %vm240_vm4, %v366_v48  ;;  %v763_v20 = vsel %vm238_vm3, %v757_v6, 0.0  ;;  %v768_v10 = vld [vmem:[#allocation3 + $0x112] sm:$0xff] }
 0x152   : > { %v1124_v47 = vld [vmem:[#allocation3 + $0x105] sm:$0xff]  ;;  %v1009_v1 = vmul.f32 %v1005_v46, %v1586_v14  ;;  %1408 = vst.msk [vmem:[%s1676_s26 + $0x50] sm:$0xff] %vm238_vm3, %v645_v5  ;;  %v882_v22 = vsel %vm238_vm3, %v876_v7, 0.0  ;;  %v1001_v25 = vsel %vm238_vm3, %v995_v9, 0.0  ;;  %v653_v8 = vmul.f32 %v649_v4, %v1613_v28  ;;  %v887_v27 = vld [vmem:[#allocation3 + $0x113] sm:$0xff] }
 0x153   : > { %v1243_v49 = vld [vmem:[#allocation3 + $0x106] sm:$0xff]  ;;  %v1128_v2 = vmul.f32 %v1124_v47, %v1586_v14  ;;  %v764_v16 = vadd.f32 %v763_v20, %v762_v24  ;;  %v883_v17 = vadd.f32 %v882_v22, %v881_v52  ;;  %v1002_v11 = vadd.f32 %v1001_v25, %v1000_v53  ;;  %v1006_v29 = vld [vmem:[#allocation3 + $0x114] sm:$0xff] }
 0x154   : > { %v1247_v12 = vmul.f32 %v1243_v49, %v1586_v14  ;;  %v563_v26 = vld [vmem:[#allocation3 + $0x180] sm:$0xff]  ;;  %v1120_v13 = vsel %vm238_vm3, %v1114_v15, 0.0  ;;  %v1125_v30 = vld [vmem:[#allocation3 + $0x115] sm:$0xff]  ;;  %v537_v33 = vsel %vm238_vm3, %v533_v55, 0.0  ;;  %v656_v34 = vsel %vm238_vm3, %v652_v59, 0.0 }
 0x155   : > { %v395_v31 = vpop.permute.xlu1 %394  ;;  %v430_v32 = vpop.permute.xlu2 %429  ;;  %v1121_v36 = vadd.f32 %v1120_v13, %v1119_v56  ;;  %v1239_v37 = vsel %vm238_vm3, %v1233_v18, 0.0  ;;  %v1244_v38 = vld [vmem:[#allocation3 + $0x116] sm:$0xff]  ;;  %v775_v40 = vsel %vm238_vm3, %v771_v60, 0.0  ;;  %1415 = vst.msk [vmem:[%s1676_s26 + $0x88] sm:$0xff] %vm238_vm3, %v764_v16  ;;  %v567_v23 = vmul.f32 %v563_v26, %v1586_v14  ;;  %v546_v53 = vld [vmem:[#allocation3 + $0x140] sm:$0xff] }
 0x156   : > { %v393_v39 = vpop.permute.xlu0 %392  ;;  %v1240_v41 = vadd.f32 %v1239_v37, %v1238_v54  ;;  %v772_v45 = vmul.f32 %v768_v10, %v1613_v28  ;;  %1422 = vst.msk [vmem:[%s1676_s26 + $0xc0] sm:$0xff] %vm238_vm3, %v883_v17  ;;  %v538_v42 = vsel %vm238_vm3, %v534_v19, 0.0  ;;  %v891_v44 = vmul.f32 %v887_v27, %v1613_v28  ;;  %v665_v56 = vld [vmem:[#allocation3 + $0x141] sm:$0xff] }
 0x157   : > { %v1010_v24 = vmul.f32 %v1006_v29, %v1613_v28  ;;  %v1129_v46 = vmul.f32 %v1125_v30, %v1613_v28  ;;  %v894_v47 = vsel %vm238_vm3, %v890_v0, 0.0  ;;  %v1013_v49 = vsel %vm238_vm3, %v1009_v1, 0.0  ;;  %1429 = vst.msk [vmem:[%s1676_s26 + $0xf8] sm:$0xff] %vm238_vm3, %v1002_v11  ;;  %v784_v54 = vld [vmem:[#allocation3 + $0x142] sm:$0xff] }
 0x158   : > { %v657_v48 = vsel %vm238_vm3, %v653_v8, 0.0  ;;  %v1248_v52 = vmul.f32 %v1244_v38, %v1613_v28  ;;  %v1132_v57 = vsel %vm238_vm3, %v1128_v2, 0.0  ;;  %1436 = vst.msk [vmem:[%s1676_s26 + $0x130] sm:$0xff] %vm238_vm3, %v1121_v36  ;;  %v776_v58 = vsel %vm238_vm3, %v772_v45, 0.0  ;;  %v650_v61 = vld [vmem:[#allocation3 + $0x121] sm:$0xff] }
 0x159   : > { %v895_v50 = vsel %vm238_vm3, %v891_v44, 0.0  ;;  %v1014_v51 = vsel %vm238_vm3, %v1010_v24, 0.0  ;;  %v1251_v55 = vsel %vm238_vm3, %v1247_v12, 0.0  ;;  %1443 = vst.msk [vmem:[%s1676_s26 + $0x168] sm:$0xff] %vm238_vm3, %v1240_v41  ;;  %v2042_v59 = vsel %vm238_vm3, %v567_v23, 0.0  ;;  %v769_v62 = vld [vmem:[#allocation3 + $0x122] sm:$0xff] }
 0x15a   : > { %v2044_v60 = vadd.f32 %v538_v42, %v537_v33  ;;  %v888_v63 = vld [vmem:[#allocation3 + $0x123] sm:$0xff]  ;;  %v658_v0 = vadd.f32 %v657_v48, %v656_v34  ;;  %v1133_v1 = vsel %vm238_vm3, %v1129_v46, 0.0  ;;  %v550_v2 = vmul.f32 %v546_v53, %v1586_v14  ;;  %416 = vst.msk [vmem:[#allocation3 + $0x158] sm:$0x3f] %vm240_vm4, %v395_v31 }
 0x15b   : > { %v669_v3 = vmul.f32 %v665_v56, %v1586_v14  ;;  %v903_v4 = vld [vmem:[#allocation3 + $0x143] sm:$0xff]  ;;  %v777_v7 = vadd.f32 %v776_v58, %v775_v40  ;;  %v896_v9 = vadd.f32 %v895_v50, %v894_v47  ;;  %v1015_v12 = vadd.f32 %v1014_v51, %v1013_v49  ;;  %450 = vst.msk [vmem:[#allocation3 + $0x1a0] sm:$0xff] %vm238_vm3, %v430_v32 }
 0x15c   : > { %v1022_v5 = vld [vmem:[#allocation3 + $0x144] sm:$0xff]  ;;  %v1252_v15 = vsel %vm238_vm3, %v1248_v52, 0.0  ;;  %v788_v25 = vmul.f32 %v784_v54, %v1586_v14  ;;  %v654_v26 = vmul.f32 %v650_v61, %v1600_v21  ;;  %v773_v8 = vmul.f32 %v769_v62, %v1600_v21  ;;  %415 = vst.msk [vmem:[#allocation3 + $0x150] sm:$0xff] %vm238_vm3, %v393_v39 }
 0x15d   : > { %v1141_v6 = vld [vmem:[#allocation3 + $0x145] sm:$0xff]  ;;  %v426_v20 = vpop.permute.xlu1 %425  ;;  %v370_v22 = vpop.permute.xlu2 %369  ;;  %v892_v10 = vmul.f32 %v888_v63, %v1600_v21  ;;  %v1134_v11 = vadd.f32 %v1133_v1, %v1132_v57  ;;  %v907_v13 = vmul.f32 %v903_v4, %v1586_v14  ;;  %v1026_v27 = vmul.f32 %v1022_v5, %v1586_v14 }
 0x15e   : > { %v1260_v18 = vld [vmem:[#allocation3 + $0x146] sm:$0xff]  ;;  %v424_v17 = vpop.permute.xlu0 %423  ;;  %v1145_v29 = vmul.f32 %v1141_v6, %v1586_v14  ;;  %448 = vst.msk [vmem:[#allocation3 + $0x190] sm:$0xff] %vm238_vm3, %v426_v20  ;;  %v1253_v31 = vadd.f32 %v1252_v15, %v1251_v55  ;;  %v554_v32 = vsel %vm238_vm3, %v550_v2, 0.0  ;;  %v673_v36 = vsel %vm238_vm3, %v669_v3, 0.0 }
 0x15f   : > { %v1007_v19 = vld [vmem:[#allocation3 + $0x124] sm:$0xff]  ;;  %v1264_v33 = vmul.f32 %v1260_v18, %v1586_v14  ;;  %387 = vst.msk [vmem:[#allocation3 + $0x138] sm:$0x3f] %vm240_vm4, %v370_v22  ;;  %v659_v37 = vsel %vm238_vm3, %v654_v26, 0.0  ;;  %v778_v38 = vsel %vm238_vm3, %v773_v8, 0.0  ;;  %v792_v40 = vsel %vm238_vm3, %v788_v25, 0.0 }
 0x160   : > { %v1126_v16 = vld [vmem:[#allocation3 + $0x125] sm:$0xff]  ;;  %v1011_v34 = vmul.f32 %v1007_v19, %v1600_v21  ;;  %447 = vst.msk [vmem:[#allocation3 + $0x188] sm:$0x3f] %vm240_vm4, %v424_v17  ;;  %v897_v41 = vsel %vm238_vm3, %v892_v10, 0.0  ;;  %v911_v42 = vsel %vm238_vm3, %v907_v13, 0.0  ;;  %v1030_v44 = vsel %vm238_vm3, %v1026_v27, 0.0 }
 0x161   : > { %v1245_v30 = vld [vmem:[#allocation3 + $0x126] sm:$0xff]  ;;  %v1130_v39 = vmul.f32 %v1126_v16, %v1600_v21  ;;  %v1149_v24 = vsel %vm238_vm3, %v1145_v29, 0.0  ;;  %v2079_v47 = vsel %vm238_vm3, %v1264_v33, 0.0  ;;  %v2081_v49 = vadd.f32 %v659_v37, %v658_v0 }
 0x162   : > { %v1016_v23 = vsel %vm238_vm3, %v1011_v34, 0.0  ;;  %v1249_v45 = vmul.f32 %v1245_v30, %v1600_v21  ;;  %v2083_v48 = vadd.f32 %v778_v38, %v777_v7  ;;  %v565_v53 = vld [vmem:[#allocation3 + $0x1a0] sm:$0xff]  ;;  %v2086_v56 = vadd.f32 %v897_v41, %v896_v9 }
 0x163   : > { %v1135_v46 = vsel %vm238_vm3, %v1130_v39, 0.0  ;;  %v2088_v57 = vadd.f32 %v1016_v23, %v1015_v12  ;;  %v569_v58 = vmul.f32 %v565_v53, %v1600_v21  ;;  %v547_v50 = vld [vmem:[#allocation3 + $0x150] sm:$0xff]  ;;  %v2093_v62 = vadd.f32 %v1983_v43, %v2044_v60 }
 0x164   : > { %v1254_v52 = vsel %vm238_vm3, %v1249_v45, 0.0  ;;  %v666_v51 = vld [vmem:[#allocation3 + $0x151] sm:$0xff]  ;;  %v2095_v63 = vadd.f32 %v1135_v46, %v1134_v11  ;;  %v551_v0 = vmul.f32 %v547_v50, %v1613_v28 }
 0x165   : > { %v785_v54 = vld [vmem:[#allocation3 + $0x152] sm:$0xff]  ;;  %v399_v55 = vpop.permute.xlu1 %398  ;;  %v434_v61 = vpop.permute.xlu2 %433  ;;  %v670_v1 = vmul.f32 %v666_v51, %v1613_v28  ;;  %v2101_v7 = vadd.f32 %v1254_v52, %v1253_v31  ;;  %v2112_v26 = vsel %vm238_vm3, %v569_v58, 0.0 }
 0x166   : > { %v789_v2 = vmul.f32 %v785_v54, %v1613_v28  ;;  %v904_v3 = vld [vmem:[#allocation3 + $0x153] sm:$0xff]  ;;  %418 = vst.msk [vmem:[#allocation3 + $0x168] sm:$0x3f] %vm240_vm4, %v399_v55  ;;  %v397_v6 = vpop.permute.xlu0 %396  ;;  %v555_v15 = vsel %vm238_vm3, %v551_v0, 0.0 }
 0x167   : > { %v1023_v4 = vld [vmem:[#allocation3 + $0x154] sm:$0xff]  ;;  %v908_v9 = vmul.f32 %v904_v3, %v1613_v28  ;;  %452 = vst.msk [vmem:[#allocation3 + $0x1b0] sm:$0xff] %vm238_vm3, %v434_v61  ;;  %v674_v18 = vsel %vm238_vm3, %v670_v1, 0.0  ;;  %v2114_v8 = vadd.f32 %v555_v15, %v554_v32  ;;  %v682_v34 = vld [vmem:[#allocation3 + $0x181] sm:$0xff] }
 0x168   : > { %v1142_v5 = vld [vmem:[#allocation3 + $0x155] sm:$0xff]  ;;  %v1027_v43 = vmul.f32 %v1023_v4, %v1613_v28  ;;  %v793_v19 = vsel %vm238_vm3, %v789_v2, 0.0  ;;  %v2116_v10 = vadd.f32 %v674_v18, %v673_v36  ;;  %417 = vst.msk [vmem:[#allocation3 + $0x160] sm:$0xff] %vm238_vm3, %v397_v6  ;;  %v801_v52 = vld [vmem:[#allocation3 + $0x182] sm:$0xff] }
 0x169   : > { %v1146_v60 = vmul.f32 %v1142_v5, %v1613_v28  ;;  %v1261_v12 = vld [vmem:[#allocation3 + $0x156] sm:$0xff]  ;;  %v912_v16 = vsel %vm238_vm3, %v908_v9, 0.0  ;;  %v2120_v27 = vadd.f32 %v793_v19, %v792_v40  ;;  %v920_v53 = vld [vmem:[#allocation3 + $0x183] sm:$0xff]  ;;  %v805_v6 = vmul.f32 %v801_v52, %v1586_v14 }
 0x16a   : > { %v1265_v20 = vmul.f32 %v1261_v12, %v1613_v28  ;;  %v564_v22 = vld [vmem:[#allocation3 + $0x190] sm:$0xff]  ;;  %v2122_v29 = vadd.f32 %v912_v16, %v911_v42  ;;  %v1031_v30 = vsel %vm238_vm3, %v1027_v43, 0.0  ;;  %v1039_v58 = vld [vmem:[#allocation3 + $0x184] sm:$0xff]  ;;  %v924_v9 = vmul.f32 %v920_v53, %v1586_v14 }
 0x16b   : > { %v683_v25 = vld [vmem:[#allocation3 + $0x191] sm:$0xff]  ;;  %v1150_v31 = vsel %vm238_vm3, %v1146_v60, 0.0  ;;  %v2126_v36 = vadd.f32 %v1031_v30, %v1030_v44  ;;  %v568_v39 = vmul.f32 %v564_v22, %v1613_v28  ;;  %v1158_v0 = vld [vmem:[#allocation3 + $0x185] sm:$0xff]  ;;  %v1043_v43 = vmul.f32 %v1039_v58, %v1586_v14 }
 0x16c   : > { %v802_v17 = vld [vmem:[#allocation3 + $0x192] sm:$0xff]  ;;  %v2128_v37 = vadd.f32 %v1150_v31, %v1149_v24  ;;  %v1269_v38 = vsel %vm238_vm3, %v1265_v20, 0.0  ;;  %v687_v40 = vmul.f32 %v683_v25, %v1613_v28  ;;  %v686_v24 = vmul.f32 %v682_v34, %v1586_v14  ;;  %v1277_v1 = vld [vmem:[#allocation3 + $0x186] sm:$0xff] }
 0x16d   : > { %v921_v11 = vld [vmem:[#allocation3 + $0x193] sm:$0xff]  ;;  %v806_v41 = vmul.f32 %v802_v17, %v1613_v28  ;;  %v572_v42 = vsel %vm238_vm3, %v568_v39, 0.0  ;;  %v368_v50 = vpop.permute.xlu1 %367  ;;  %v2141_v51 = vadd.f32 %v1269_v38, %v2079_v47  ;;  %v1162_v15 = vmul.f32 %v1158_v0, %v1586_v14 }
 0x16e   : > { %v1040_v13 = vld [vmem:[#allocation3 + $0x194] sm:$0xff]  ;;  %v925_v23 = vmul.f32 %v921_v11, %v1613_v28  ;;  %v573_v54 = vadd.f32 %v572_v42, %v2042_v59  ;;  %v691_v55 = vsel %vm238_vm3, %v687_v40, 0.0  ;;  %386 = vst.msk [vmem:[#allocation3 + $0x130] sm:$0xff] %vm238_vm3, %v368_v50  ;;  %v690_v47 = vsel %vm238_vm3, %v686_v24, 0.0 }
 0x16f   : > { %v1159_v33 = vld [vmem:[#allocation3 + $0x195] sm:$0xff]  ;;  %v1044_v45 = vmul.f32 %v1040_v13, %v1613_v28  ;;  %v810_v61 = vsel %vm238_vm3, %v806_v41, 0.0  ;;  %v548_v60 = vld [vmem:[#allocation3 + $0x160] sm:$0xff]  ;;  %v2156_v12 = vadd.f32 %v691_v55, %v690_v47  ;;  %v1281_v18 = vmul.f32 %v1277_v1, %v1586_v14 }
 0x170   : > { %v1278_v32 = vld [vmem:[#allocation3 + $0x196] sm:$0xff]  ;;  %v1163_v46 = vmul.f32 %v1159_v33, %v1613_v28  ;;  %v929_v3 = vsel %vm238_vm3, %v925_v23, 0.0  ;;  %v809_v20 = vsel %vm238_vm3, %v805_v6, 0.0  ;;  %v928_v22 = vsel %vm238_vm3, %v924_v9, 0.0  ;;  %v667_v17 = vld [vmem:[#allocation3 + $0x161] sm:$0xff] }
 0x171   : > { %v1282_v44 = vmul.f32 %v1278_v32, %v1613_v28  ;;  %v566_v2 = vld [vmem:[#allocation3 + $0x1b0] sm:$0xff]  ;;  %v432_v28 = vpop.permute.xlu0 %431  ;;  %v1048_v4 = vsel %vm238_vm3, %v1044_v45, 0.0  ;;  %v1047_v25 = vsel %vm238_vm3, %v1043_v43, 0.0  ;;  %v552_v16 = vmul.f32 %v548_v60, %v1600_v21  ;;  %v786_v11 = vld [vmem:[#allocation3 + $0x162] sm:$0xff] }
 0x172   : > { %v1167_v5 = vsel %vm238_vm3, %v1163_v46, 0.0  ;;  %451 = vst.msk [vmem:[#allocation3 + $0x1a8] sm:$0x3f] %vm240_vm4, %v432_v28  ;;  %v570_v19 = vmul.f32 %v566_v2, %v1620_v35  ;;  %v2165_v13 = vadd.f32 %v810_v61, %v809_v20  ;;  %v2167_v30 = vadd.f32 %v929_v3, %v928_v22  ;;  %v905_v33 = vld [vmem:[#allocation3 + $0x163] sm:$0xff] }
 0x173   : > { %v1286_v59 = vsel %vm238_vm3, %v1282_v44, 0.0  ;;  %v1166_v31 = vsel %vm238_vm3, %v1162_v15, 0.0  ;;  %v575_v14 = vadd.f32 %v2112_v26, %v573_v54  ;;  %v1024_v32 = vld [vmem:[#allocation3 + $0x164] sm:$0xff]  ;;  %v2171_v38 = vadd.f32 %v1048_v4, %v1047_v25 }
 0x174   : > { %v1143_v34 = vld [vmem:[#allocation3 + $0x165] sm:$0xff]  ;;  %v2173_v39 = vadd.f32 %v1167_v5, %v1166_v31  ;;  %v1285_v40 = vsel %vm238_vm3, %v1281_v18, 0.0  ;;  %v576_v41 = vsel %vm238_vm3, %v570_v19, 0.0  ;;  %v557_v46 = vsel %vm238_vm3, %v552_v16, 0.0 }
 0x175   : > { %v1262_v23 = vld [vmem:[#allocation3 + $0x166] sm:$0xff]  ;;  %v2177_v45 = vadd.f32 %v1286_v59, %v1285_v40  ;;  %v577_v42 = vadd.f32 %v576_v41, %v575_v14  ;;  %v671_v26 = vmul.f32 %v667_v17, %v1600_v21  ;;  %v532_v44 = vld [vmem:[#allocation3 + $0x130] sm:$0xff]  ;;  %v403_v52 = vpop.permute.xlu1 %402  ;;  %v790_v53 = vmul.f32 %v786_v11, %v1600_v21 }
 0x176   : > { %v651_v24 = vld [vmem:[#allocation3 + $0x131] sm:$0xff]  ;;  %v909_v58 = vmul.f32 %v905_v33, %v1600_v21  ;;  %v1028_v50 = vmul.f32 %v1024_v32, %v1600_v21  ;;  %v1147_v54 = vmul.f32 %v1143_v34, %v1600_v21  ;;  %420 = vst.msk [vmem:[#allocation3 + $0x178] sm:$0x3f] %vm240_vm4, %v403_v52  ;;  %v1266_v0 = vmul.f32 %v1262_v23, %v1600_v21 }
 0x177   : > { %1404 = vst.msk [vmem:[%s1676_s26 + $0x30] sm:$0xff] %vm238_vm3, %v577_v42  ;;  %v676_v61 = vsel %vm238_vm3, %v671_v26, 0.0  ;;  %v536_v1 = vmul.f32 %v532_v44, %v1620_v35  ;;  %v655_v2 = vmul.f32 %v651_v24, %v1620_v35  ;;  %v2193_v28 = vadd.f32 %v557_v46, %v2114_v8  ;;  %v770_v47 = vld [vmem:[#allocation3 + $0x132] sm:$0xff] }
 0x178   : > { %v795_v3 = vsel %vm238_vm3, %v790_v53, 0.0  ;;  %v914_v4 = vsel %vm238_vm3, %v909_v58, 0.0  ;;  %v1033_v5 = vsel %vm238_vm3, %v1028_v50, 0.0  ;;  %v889_v59 = vld [vmem:[#allocation3 + $0x133] sm:$0xff]  ;;  %v2199_v6 = vadd.f32 %v676_v61, %v2116_v10 }
 0x179   : > { %v401_v55 = vpop.permute.xlu0 %400  ;;  %v2202_v9 = vadd.f32 %v795_v3, %v2120_v27  ;;  %v2205_v43 = vadd.f32 %v914_v4, %v2122_v29  ;;  %v1152_v8 = vsel %vm238_vm3, %v1147_v54, 0.0  ;;  %v1008_v60 = vld [vmem:[#allocation3 + $0x134] sm:$0xff]  ;;  %v2210_v19 = vadd.f32 %v1033_v5, %v2126_v36  ;;  %v684_v29 = vld [vmem:[#allocation3 + $0x1a1] sm:$0xff] }
 0x17a   : > { %v1127_v15 = vld [vmem:[#allocation3 + $0x135] sm:$0xff]  ;;  %419 = vst.msk [vmem:[#allocation3 + $0x170] sm:$0xff] %vm238_vm3, %v401_v55  ;;  %v2213_v10 = vadd.f32 %v1152_v8, %v2128_v37  ;;  %v542_v27 = vsel %vm238_vm3, %v536_v1, 0.0  ;;  %v661_v20 = vsel %vm238_vm3, %v655_v2, 0.0  ;;  %v803_v22 = vld [vmem:[#allocation3 + $0x1a2] sm:$0xff]  ;;  %v1271_v16 = vsel %vm238_vm3, %v1266_v0, 0.0 }
 0x17b   : > { %v1246_v18 = vld [vmem:[#allocation3 + $0x136] sm:$0xff]  ;;  %v922_v25 = vld [vmem:[#allocation3 + $0x1a3] sm:$0xff]  ;;  %v543_v17 = vadd.f32 %v542_v27, %v2093_v62  ;;  %v662_v11 = vadd.f32 %v661_v20, %v2081_v49  ;;  %v774_v36 = vmul.f32 %v770_v47, %v1620_v35  ;;  %v893_v31 = vmul.f32 %v889_v59, %v1620_v35 }
 0x17c   : > { %v1012_v37 = vmul.f32 %v1008_v60, %v1620_v35  ;;  %v1131_v14 = vmul.f32 %v1127_v15, %v1620_v35  ;;  %v1250_v33 = vmul.f32 %v1246_v18, %v1620_v35  ;;  %v688_v34 = vmul.f32 %v684_v29, %v1600_v21  ;;  %v1041_v46 = vld [vmem:[#allocation3 + $0x1a4] sm:$0xff] }
 0x17d   : > { %1402 = vst.msk [vmem:[%s1676_s26 + $0x20] sm:$0xff] %vm238_vm3, %v543_v17  ;;  %v780_v32 = vsel %vm238_vm3, %v774_v36, 0.0  ;;  %v807_v62 = vmul.f32 %v803_v22, %v1600_v21  ;;  %v926_v49 = vmul.f32 %v922_v25, %v1600_v21  ;;  %v899_v41 = vsel %vm238_vm3, %v893_v31, 0.0  ;;  %v1160_v58 = vld [vmem:[#allocation3 + $0x1a5] sm:$0xff] }
 0x17e   : > { %1409 = vst.msk [vmem:[%s1676_s26 + $0x58] sm:$0xff] %vm238_vm3, %v662_v11  ;;  %v781_v40 = vadd.f32 %v780_v32, %v2083_v48  ;;  %v1018_v23 = vsel %vm238_vm3, %v1012_v37, 0.0  ;;  %v1137_v42 = vsel %vm238_vm3, %v1131_v14, 0.0  ;;  %v900_v44 = vadd.f32 %v899_v41, %v2086_v56  ;;  %v1279_v50 = vld [vmem:[#allocation3 + $0x1a6] sm:$0xff] }
 0x17f   : > { %v1019_v24 = vadd.f32 %v1018_v23, %v2088_v57  ;;  %v1138_v52 = vadd.f32 %v1137_v42, %v2095_v63  ;;  %v1256_v53 = vsel %vm238_vm3, %v1250_v33, 0.0  ;;  %v2243_v48 = vadd.f32 %v1271_v16, %v2141_v51 }
 0x180   : > { %1416 = vst.msk [vmem:[%s1676_s26 + $0x90] sm:$0xff] %vm238_vm3, %v781_v40  ;;  %v1257_v54 = vadd.f32 %v1256_v53, %v2101_v7  ;;  %v693_v56 = vsel %vm238_vm3, %v688_v34, 0.0  ;;  %v812_v57 = vsel %vm238_vm3, %v807_v62, 0.0  ;;  %v931_v51 = vsel %vm238_vm3, %v926_v49, 0.0 }
 0x181   : > { %v436_v26 = vpop.permute.xlu0 %435  ;;  %v549_v63 = vld [vmem:[#allocation3 + $0x170] sm:$0xff]  ;;  %1423 = vst.msk [vmem:[%s1676_s26 + $0xc8] sm:$0xff] %vm238_vm3, %v900_v44  ;;  %v694_v61 = vadd.f32 %v693_v56, %v2156_v12  ;;  %v813_v0 = vadd.f32 %v812_v57, %v2165_v13  ;;  %v1045_v1 = vmul.f32 %v1041_v46, %v1600_v21  ;;  %v1164_v4 = vmul.f32 %v1160_v58, %v1600_v21 }
 0x182   : > { %453 = vst.msk [vmem:[#allocation3 + $0x1b8] sm:$0x3f] %vm240_vm4, %v436_v26  ;;  %v668_v55 = vld [vmem:[#allocation3 + $0x171] sm:$0xff]  ;;  %v1283_v5 = vmul.f32 %v1279_v50, %v1600_v21  ;;  %v553_v47 = vmul.f32 %v549_v63, %v1620_v35  ;;  %v932_v15 = vadd.f32 %v931_v51, %v2167_v30 }
 0x183   : > { %v787_v2 = vld [vmem:[#allocation3 + $0x172] sm:$0xff]  ;;  %1430 = vst.msk [vmem:[%s1676_s26 + $0x100] sm:$0xff] %vm238_vm3, %v1019_v24  ;;  %v672_v12 = vmul.f32 %v668_v55, %v1620_v35  ;;  %v1050_v13 = vsel %vm238_vm3, %v1045_v1, 0.0  ;;  %v1169_v18 = vsel %vm238_vm3, %v1164_v4, 0.0 }
 0x184   : > { %v906_v7 = vld [vmem:[#allocation3 + $0x173] sm:$0xff]  ;;  %1437 = vst.msk [vmem:[%s1676_s26 + $0x138] sm:$0xff] %vm238_vm3, %v1138_v52  ;;  %v791_v59 = vmul.f32 %v787_v2, %v1620_v35  ;;  %v1051_v21 = vadd.f32 %v1050_v13, %v2171_v38  ;;  %v559_v27 = vsel %vm238_vm3, %v553_v47, 0.0  ;;  %v1170_v29 = vadd.f32 %v1169_v18, %v2173_v39 }
 0x185   : > { %v1025_v3 = vld [vmem:[#allocation3 + $0x174] sm:$0xff]  ;;  %v910_v8 = vmul.f32 %v906_v7, %v1620_v35  ;;  %1444 = vst.msk [vmem:[%s1676_s26 + $0x170] sm:$0xff] %vm238_vm3, %v1257_v54  ;;  %v1288_v22 = vsel %vm238_vm3, %v1283_v5, 0.0  ;;  %v560_v25 = vadd.f32 %v559_v27, %v2193_v28  ;;  %v678_v16 = vsel %vm238_vm3, %v672_v12, 0.0 }
 0x186   : > { %v1029_v60 = vmul.f32 %v1025_v3, %v1620_v35  ;;  %v1144_v20 = vld [vmem:[#allocation3 + $0x175] sm:$0xff]  ;;  %v679_v30 = vadd.f32 %v678_v16, %v2199_v6  ;;  %v797_v38 = vsel %vm238_vm3, %v791_v59, 0.0  ;;  %v1289_v57 = vadd.f32 %v1288_v22, %v2177_v45 }
 0x187   : > { %v1263_v17 = vld [vmem:[#allocation3 + $0x176] sm:$0xff]  ;;  %v916_v11 = vsel %vm238_vm3, %v910_v8, 0.0  ;;  %1403 = vst.msk [vmem:[%s1676_s26 + $0x28] sm:$0xff] %vm238_vm3, %v560_v25  ;;  %v798_v28 = vadd.f32 %v797_v38, %v2202_v9  ;;  %v1148_v6 = vmul.f32 %v1144_v20, %v1620_v35 }
 0x188   : > { %v1035_v36 = vsel %vm238_vm3, %v1029_v60, 0.0  ;;  %v917_v14 = vadd.f32 %v916_v11, %v2205_v43  ;;  %1410 = vst.msk [vmem:[%s1676_s26 + $0x60] sm:$0xff] %vm238_vm3, %v679_v30  ;;  %v1267_v49 = vmul.f32 %v1263_v17, %v1620_v35 }
 0x189   : > { %v685_v31 = vld [vmem:[#allocation3 + $0x1b1] sm:$0xff]  ;;  %v1036_v33 = vadd.f32 %v1035_v36, %v2210_v19  ;;  %1417 = vst.msk [vmem:[%s1676_s26 + $0x98] sm:$0xff] %vm238_vm3, %v798_v28  ;;  %v1154_v43 = vsel %vm238_vm3, %v1148_v6, 0.0 }
 0x18a   : > { %v804_v37 = vld [vmem:[#allocation3 + $0x1b2] sm:$0xff]  ;;  %v689_v40 = vmul.f32 %v685_v31, %v1620_v35  ;;  %1424 = vst.msk [vmem:[%s1676_s26 + $0xd0] sm:$0xff] %vm238_vm3, %v917_v14  ;;  %v1155_v46 = vadd.f32 %v1154_v43, %v2213_v10  ;;  %v1273_v26 = vsel %vm238_vm3, %v1267_v49, 0.0 }
 0x18b   : > { %v923_v39 = vld [vmem:[#allocation3 + $0x1b3] sm:$0xff]  ;;  %v808_v41 = vmul.f32 %v804_v37, %v1620_v35  ;;  %1431 = vst.msk [vmem:[%s1676_s26 + $0x108] sm:$0xff] %vm238_vm3, %v1036_v33  ;;  %v1274_v52 = vadd.f32 %v1273_v26, %v2243_v48 }
 0x18c   : > { %v1042_v32 = vld [vmem:[#allocation3 + $0x1b4] sm:$0xff]  ;;  %v927_v9 = vmul.f32 %v923_v39, %v1620_v35  ;;  %v695_v44 = vsel %vm238_vm3, %v689_v40, 0.0  ;;  %1438 = vst.msk [vmem:[%s1676_s26 + $0x140] sm:$0xff] %vm238_vm3, %v1155_v46 }
 0x18d   : > { %v1161_v34 = vld [vmem:[#allocation3 + $0x1b5] sm:$0xff]  ;;  %v1046_v19 = vmul.f32 %v1042_v32, %v1620_v35  ;;  %v814_v24 = vsel %vm238_vm3, %v808_v41, 0.0  ;;  %v696_v53 = vadd.f32 %v695_v44, %v694_v61  ;;  %1445 = vst.msk [vmem:[%s1676_s26 + $0x178] sm:$0xff] %vm238_vm3, %v1274_v52 }
 0x18e   : > { %v1280_v62 = vld [vmem:[#allocation3 + $0x1b6] sm:$0xff]  ;;  %v1165_v23 = vmul.f32 %v1161_v34, %v1620_v35  ;;  %v933_v58 = vsel %vm238_vm3, %v927_v9, 0.0 }
 0x18f   : > { %v1284_v42 = vmul.f32 %v1280_v62, %v1620_v35  ;;  %v815_v35 = vadd.f32 %v814_v24, %v813_v0  ;;  %v934_v10 = vadd.f32 %v933_v58, %v932_v15  ;;  %v1052_v50 = vsel %vm238_vm3, %v1046_v19, 0.0  ;;  %1411 = vst.msk [vmem:[%s1676_s26 + $0x68] sm:$0xff] %vm238_vm3, %v696_v53 }
 0x190   : > { %v1171_v54 = vsel %vm238_vm3, %v1165_v23, 0.0  ;;  %v1053_v48 = vadd.f32 %v1052_v50, %v1051_v21 }
 0x191   : > { %v1290_v56 = vsel %vm238_vm3, %v1284_v42, 0.0  ;;  %v1172_v63 = vadd.f32 %v1171_v54, %v1170_v29  ;;  %1418 = vst.msk [vmem:[%s1676_s26 + $0xa0] sm:$0xff] %vm238_vm3, %v815_v35 }
 0x192   : > { %v1291_v55 = vadd.f32 %v1290_v56, %v1289_v57  ;;  %1425 = vst.msk [vmem:[%s1676_s26 + $0xd8] sm:$0xff] %vm238_vm3, %v934_v10 }
 0x193   : > { %1432 = vst.msk [vmem:[%s1676_s26 + $0x110] sm:$0xff] %vm238_vm3, %v1053_v48 }
 0x194   : > { %1439 = vst.msk [vmem:[%s1676_s26 + $0x148] sm:$0xff] %vm238_vm3, %v1172_v63 }
 0x195   : > { %1446 = vst.msk [vmem:[%s1676_s26 + $0x180] sm:$0xff] %vm238_vm3, %v1291_v55 }
 0x196 PF: > { %s12_s11 = sadd.s32 1, %s1506_s11   ;;  %s2342_s9 = smov %s1502_s10 }
 0x197   : > { %p9_p5 = scmp.ge.s32.totalorder %s12_s11, 4   ;;  %s2343_s10 = smov %s2345_s12 }
 0x199   :  { %11 = sbr.rel (!%p9_p5) target bundleno = 2 (0x2), region = 115 }

</bundles_post_ra>
